<compile_context>
chip_gen: v7x
topology: tpu7x:2x2x1
jax: 0.10.0
libtpu: 0.0.40
codegen_flags: <defaults>
</compile_context>

<pallas_src>
import jax
import jax.numpy as jnp
from jax.experimental import pallas as pl
from jax.experimental.pallas import tpu as pltpu

# ----------------------------- static configuration -------------------------
B = 2           # batch
T = 8           # sequence length
D_IN = 16       # d_encoder_in
D_EH = 32       # d_encoder_h
D_MODEL = 32    # d_model
N_HEAD = 2      # n_head
D_HEAD = 16     # d_head
D_PFF = 64      # d_pff_inner
D_DH = 32       # d_decoder_h
D_OUT = 16      # d_out
N_LAYER = 2     # n_layer
LN_EPS = 1e-5
LANES = 128
HD = N_HEAD * D_HEAD


def _r8(n):
    return -(-n // 8) * 8


# ----------------------------- packed parameter layout -----------------------
# Weight slab: each matrix occupies rows [off, off + round8(rows)) and lanes
# [0, cols) of a (W_ROWS, 128) f32 buffer.
_W_SHAPES = [
    ("enc_w1", (D_IN, D_EH)),
    ("enc_w2", (D_EH, D_MODEL)),
    ("kf_w1", (2, D_MODEL)),
    ("kf_w2", (D_MODEL, D_MODEL)),
]
for _i in range(N_LAYER):
    _W_SHAPES += [
        (f"att_wqkv_{_i}", (D_MODEL, 3 * HD)),
        (f"att_wo_{_i}", (HD, D_MODEL)),
        (f"pff_w1_{_i}", (D_MODEL, D_PFF)),
        (f"pff_w2_{_i}", (D_PFF, D_MODEL)),
    ]
_W_SHAPES += [("dec_w1", (D_MODEL, D_DH)), ("dec_w2", (D_DH, D_OUT))]

W_OFF = {}
_off = 0
for _name, (_r, _c) in _W_SHAPES:
    W_OFF[_name] = _off
    _off += _r8(_r)
W_ROWS = _off                                   # 472

# Vector slab: one (1, 128) row per bias / LN-gamma / LN-beta.
_V_NAMES = ["enc_b1", "enc_b2", "kf_b1", "kf_b2"]
for _i in range(N_LAYER):
    _V_NAMES += [f"att_bqkv_{_i}", f"att_bo_{_i}", f"att_lnw_{_i}", f"att_lnb_{_i}",
                 f"pff_b1_{_i}", f"pff_b2_{_i}", f"pff_lnw_{_i}", f"pff_lnb_{_i}"]
_V_NAMES += ["fin_lnw", "fin_lnb", "dec_b1", "dec_b2"]
V_OFF = {n: i for i, n in enumerate(_V_NAMES)}
V_ROWS = _r8(len(_V_NAMES))                     # 24

# PReLU alphas (SMEM): [enc_a1, enc_a2, kf_a, dec_a]
A_ENC1, A_ENC2, A_KF, A_DEC = 0, 1, 2, 3


# ----------------------------- the Pallas kernel -----------------------------
def context_transformer_kernel(x_ref, kp_ref, mask_ref, w_ref, v_ref, a_ref, out_ref):
    BT = B * T
    x = x_ref[...].reshape(BT, D_IN)         # (16, 16)
    kp = kp_ref[...].reshape(BT, 2)          # (16, 2)
    mask = mask_ref[...]                     # (T, T) additive mask, 0 = attend

    def wmat(name, rows, cols):
        r0 = W_OFF[name]
        return w_ref[r0:r0 + rows, 0:cols]

    def vrow(name, cols):
        r0 = V_OFF[name]
        return v_ref[r0:r0 + 1, 0:cols]      # (1, cols) -> broadcasts over rows

    def prelu(z, a):
        return jnp.where(z > 0, z, a * z)

    def layer_norm(z, wgt, bias):
        mu = jnp.mean(z, axis=-1, keepdims=True)
        zc = z - mu
        var = jnp.mean(zc * zc, axis=-1, keepdims=True)
        return zc * jax.lax.rsqrt(var + LN_EPS) * wgt + bias

    # ---- encoder (geo_embed == 'base'; dropout identity in eval) ----
    h = prelu(jnp.dot(x, wmat("enc_w1", D_IN, D_EH),
                      preferred_element_type=jnp.float32) + vrow("enc_b1", D_EH),
              a_ref[A_ENC1])
    h = prelu(jnp.dot(h, wmat("enc_w2", D_EH, D_MODEL),
                      preferred_element_type=jnp.float32) + vrow("enc_b2", D_MODEL),
              a_ref[A_ENC2])

    # ---- keyframe positional embedding (pos_encode_mode == 'kf-only') ----
    kpe = prelu(jnp.dot(kp, wmat("kf_w1", 2, D_MODEL),
                        preferred_element_type=jnp.float32) + vrow("kf_b1", D_MODEL),
                a_ref[A_KF])
    kpe = jnp.dot(kpe, wmat("kf_w2", D_MODEL, D_MODEL),
                  preferred_element_type=jnp.float32) + vrow("kf_b2", D_MODEL)
    h = h + kpe                              # (B*T, D_MODEL)

    scale = 1.0 / (float(D_HEAD) ** 0.5)

    # ---- transformer layers (post-LayerNorm, pre_lnorm=False) ----
    for i in range(N_LAYER):
        wqkv = wmat(f"att_wqkv_{i}", D_MODEL, 3 * HD)
        wo = wmat(f"att_wo_{i}", HD, D_MODEL)
        w1 = wmat(f"pff_w1_{i}", D_MODEL, D_PFF)
        w2 = wmat(f"pff_w2_{i}", D_PFF, D_MODEL)

        # one fused QKV projection over all B*T rows
        qkv = (jnp.dot(h, wqkv, preferred_element_type=jnp.float32)
               + vrow(f"att_bqkv_{i}", 3 * HD))             # (16, 96)

        att_rows = []
        for b in range(B):
            qkv_b = qkv[b * T:(b + 1) * T]                  # (T, 96), 8-aligned rows
            att_b = jnp.zeros((T, D_MODEL), jnp.float32)
            for hd in range(N_HEAD):
                q = qkv_b[:, hd * D_HEAD:(hd + 1) * D_HEAD]
                k = qkv_b[:, (N_HEAD + hd) * D_HEAD:(N_HEAD + hd + 1) * D_HEAD]
                v = qkv_b[:, (2 * N_HEAD + hd) * D_HEAD:(2 * N_HEAD + hd + 1) * D_HEAD]
                # q @ k^T without an explicit transpose (contract axis 1 of both)
                s = jax.lax.dot_general(
                    q, k, (((1,), (1,)), ((), ())),
                    preferred_element_type=jnp.float32) * scale + mask
                s = s - jnp.max(s, axis=-1, keepdims=True)
                p = jnp.exp(s)
                p = p * pl.reciprocal(jnp.sum(p, axis=-1, keepdims=True), approx=True)
                head = jnp.dot(p, v, preferred_element_type=jnp.float32)   # (T, D_HEAD)
                # accumulate through the head's slice of W_o (no lane concat)
                att_b = att_b + jnp.dot(head, wo[hd * D_HEAD:(hd + 1) * D_HEAD, :],
                                        preferred_element_type=jnp.float32)
            att_rows.append(att_b)
        att = jnp.concatenate(att_rows, axis=0) + vrow(f"att_bo_{i}", D_MODEL)
        h = layer_norm(h + att, vrow(f"att_lnw_{i}", D_MODEL), vrow(f"att_lnb_{i}", D_MODEL))

        # position-wise feed-forward (ReLU)
        f = jnp.maximum(jnp.dot(h, w1, preferred_element_type=jnp.float32)
                        + vrow(f"pff_b1_{i}", D_PFF), 0.0)
        f = jnp.dot(f, w2, preferred_element_type=jnp.float32) + vrow(f"pff_b2_{i}", D_MODEL)
        h = layer_norm(h + f, vrow(f"pff_lnw_{i}", D_MODEL), vrow(f"pff_lnb_{i}", D_MODEL))

    # ---- final layer norm + decoder MLP ----
    h = layer_norm(h, vrow("fin_lnw", D_MODEL), vrow("fin_lnb", D_MODEL))
    d = prelu(jnp.dot(h, wmat("dec_w1", D_MODEL, D_DH),
                      preferred_element_type=jnp.float32) + vrow("dec_b1", D_DH),
              a_ref[A_DEC])
    out = jnp.dot(d, wmat("dec_w2", D_DH, D_OUT),
                  preferred_element_type=jnp.float32) + vrow("dec_b2", D_OUT)
    out_ref[...] = out.reshape(B, T, D_OUT).astype(out_ref.dtype)


# ----------------------------- wrapper ---------------------------------------
@jax.jit
def context_transformer(x, keyframe_pos, mask, w_buf, v_buf, alphas):
    # Single invocation (no grid): whole problem fits easily in VMEM; on v7x a
    # batch grid would only shard ~1 us of work across 2 TCs (not worth it).
    return pl.pallas_call(
        context_transformer_kernel,
        out_shape=jax.ShapeDtypeStruct((B, T, D_OUT), jnp.float32),
        in_specs=[
            pl.BlockSpec(memory_space=pltpu.MemorySpace.VMEM),   # x
            pl.BlockSpec(memory_space=pltpu.MemorySpace.VMEM),   # keyframe_pos
            pl.BlockSpec(memory_space=pltpu.MemorySpace.VMEM),   # mask
            pl.BlockSpec(memory_space=pltpu.MemorySpace.VMEM),   # packed weights
            pl.BlockSpec(memory_space=pltpu.MemorySpace.VMEM),   # packed biases/LN
            pl.BlockSpec(memory_space=pltpu.MemorySpace.SMEM),   # PReLU alphas
        ],
        out_specs=pl.BlockSpec(memory_space=pltpu.MemorySpace.VMEM),
    )(x, keyframe_pos, mask, w_buf, v_buf, alphas)


# ----------------------------- parameters ------------------------------------
def make_params(key):
    keys = iter(jax.random.split(key, 64))

    def w(shape, scale=0.05):
        return (scale * jax.random.normal(next(keys), shape)).astype(jnp.float32)

    def b(n, scale=0.02):
        return (scale * jax.random.normal(next(keys), (n,))).astype(jnp.float32)

    p = {
        "enc_w1": w((D_IN, D_EH)), "enc_b1": b(D_EH), "enc_a1": 0.25,
        "enc_w2": w((D_EH, D_MODEL)), "enc_b2": b(D_MODEL), "enc_a2": 0.25,
        "kf_w1": w((2, D_MODEL)), "kf_b1": b(D_MODEL), "kf_a": 0.25,
        "kf_w2": w((D_MODEL, D_MODEL)), "kf_b2": b(D_MODEL),
        "fin_lnw": jnp.ones((D_MODEL,), jnp.float32),
        "fin_lnb": jnp.zeros((D_MODEL,), jnp.float32),
        "dec_w1": w((D_MODEL, D_DH)), "dec_b1": b(D_DH), "dec_a": 0.25,
        "dec_w2": w((D_DH, D_OUT)), "dec_b2": b(D_OUT),
    }
    for i in range(N_LAYER):
        p[f"att_wqkv_{i}"] = w((D_MODEL, 3 * HD))
        p[f"att_bqkv_{i}"] = b(3 * HD)
        p[f"att_wo_{i}"] = w((HD, D_MODEL))
        p[f"att_bo_{i}"] = b(D_MODEL)
        p[f"att_lnw_{i}"] = jnp.ones((D_MODEL,), jnp.float32)
        p[f"att_lnb_{i}"] = jnp.zeros((D_MODEL,), jnp.float32)
        p[f"pff_w1_{i}"] = w((D_MODEL, D_PFF))
        p[f"pff_b1_{i}"] = b(D_PFF)
        p[f"pff_w2_{i}"] = w((D_PFF, D_MODEL))
        p[f"pff_b2_{i}"] = b(D_MODEL)
        p[f"pff_lnw_{i}"] = jnp.ones((D_MODEL,), jnp.float32)
        p[f"pff_lnb_{i}"] = jnp.zeros((D_MODEL,), jnp.float32)
    return p


def pack_params(p):
    # Weights kept in f32: the kernel is prologue/DMA-latency bound at this
    # size, and f32 preserves exact module semantics (bf16 operand cast would
    # be the next lever if scaled up on v6e/v7x).
    def wpad(a):
        r, c = a.shape
        return jnp.pad(a, ((0, _r8(r) - r), (0, LANES - c)))

    w_buf = jnp.concatenate([wpad(p[name]) for name, _ in _W_SHAPES], axis=0)
    assert w_buf.shape == (W_ROWS, LANES)

    def vpad(a):
        return jnp.pad(a, (0, LANES - a.shape[0]))[None, :]

    v_buf = jnp.concatenate([vpad(p[name]) for name in _V_NAMES], axis=0)
    if v_buf.shape[0] < V_ROWS:
        v_buf = jnp.pad(v_buf, ((0, V_ROWS - v_buf.shape[0]), (0, 0)))

    alphas = jnp.array([p["enc_a1"], p["enc_a2"], p["kf_a"], p["dec_a"]], jnp.float32)
    return w_buf, v_buf, alphas


# ----------------------------- pure-JAX reference ----------------------------
def reference_forward(x, kp, mask, p):
    def prelu(z, a):
        return jnp.where(z > 0, z, a * z)

    def ln(z, wgt, bias):
        mu = jnp.mean(z, -1, keepdims=True)
        var = jnp.mean((z - mu) ** 2, -1, keepdims=True)
        return (z - mu) / jnp.sqrt(var + LN_EPS) * wgt + bias

    h = prelu(x @ p["enc_w1"] + p["enc_b1"], p["enc_a1"])
    h = prelu(h @ p["enc_w2"] + p["enc_b2"], p["enc_a2"])
    kpe = prelu(kp @ p["kf_w1"] + p["kf_b1"], p["kf_a"])
    kpe = kpe @ p["kf_w2"] + p["kf_b2"]
    h = h + kpe
    scale = 1.0 / (float(D_HEAD) ** 0.5)
    for i in range(N_LAYER):
        qkv = h @ p[f"att_wqkv_{i}"] + p[f"att_bqkv_{i}"]
        q, k, v = jnp.split(qkv, 3, axis=-1)

        def heads(t):
            return t.reshape(B, T, N_HEAD, D_HEAD).transpose(0, 2, 1, 3)

        qh, kh, vh = heads(q), heads(k), heads(v)
        s = jnp.einsum("bhqd,bhkd->bhqk", qh, kh) * scale + mask
        pa = jax.nn.softmax(s, axis=-1)
        o = jnp.einsum("bhqk,bhkd->bhqd", pa, vh).transpose(0, 2, 1, 3).reshape(B, T, HD)
        att = o @ p[f"att_wo_{i}"] + p[f"att_bo_{i}"]
        h = ln(h + att, p[f"att_lnw_{i}"], p[f"att_lnb_{i}"])
        f = jnp.maximum(h @ p[f"pff_w1_{i}"] + p[f"pff_b1_{i}"], 0.0)
        f = f @ p[f"pff_w2_{i}"] + p[f"pff_b2_{i}"]
        h = ln(h + f, p[f"pff_lnw_{i}"], p[f"pff_lnb_{i}"])
    h = ln(h, p["fin_lnw"], p["fin_lnb"])
    d = prelu(h @ p["dec_w1"] + p["dec_b1"], p["dec_a"])
    return d @ p["dec_w2"] + p["dec_b2"]


# ----------------------------- main -------------------------------------------
if __name__ == "__main__":
    key = jax.random.PRNGKey(0)
    k_x, k_kp, k_p = jax.random.split(key, 3)

    x = jax.random.normal(k_x, (B, T, D_IN), jnp.float32)
    keyframe_pos = jax.random.normal(k_kp, (B, T, 2), jnp.float32)
    mask = jnp.zeros((T, T), jnp.float32)   # additive attention mask, 0 = fully visible

    params = make_params(k_p)
    w_buf, v_buf, alphas = pack_params(params)

    out = context_transformer(x, keyframe_pos, mask, w_buf, v_buf, alphas)
    jax.block_until_ready(out)

    ref = reference_forward(x, keyframe_pos, mask, params)
    assert out.shape == (B, T, D_OUT)
    assert bool(jnp.all(jnp.isfinite(out)))
    assert bool(jnp.allclose(out, ref, atol=5e-2, rtol=5e-2)), \
        float(jnp.max(jnp.abs(out - ref)))
    print("KERNEL_OK")
</pallas_src>

<mosaic_0001>
module attributes {stable_mosaic.version = 11 : i64} {
  func.func @context_transformer_kernel(%arg0: memref<2x8x16xf32, #tpu.memory_space<vmem>>, %arg1: memref<2x8x2xf32, #tpu.memory_space<vmem>>, %arg2: memref<8x8xf32, #tpu.memory_space<vmem>>, %arg3: memref<472x128xf32, #tpu.memory_space<vmem>>, %arg4: memref<24x128xf32, #tpu.memory_space<vmem>>, %arg5: memref<4xf32, #tpu.memory_space<smem>>, %arg6: memref<2x8x16xf32, #tpu.memory_space<vmem>>) attributes {dimension_semantics = [], scalar_prefetch = 0 : i64, scratch_operands = 0 : i64, tpu.core_type = #tpu.core_type<tc>} {
    %c0 = arith.constant 0 : index
    %c0_0 = arith.constant 0 : index
    %c0_1 = arith.constant 0 : index
    %0 = vector.load %arg0[%c0, %c0_0, %c0_1] : memref<2x8x16xf32, #tpu.memory_space<vmem>>, vector<2x8x16xf32>
    %1 = vector.shape_cast %0 : vector<2x8x16xf32> to vector<16x16xf32>
    %c0_2 = arith.constant 0 : index
    %c0_3 = arith.constant 0 : index
    %c0_4 = arith.constant 0 : index
    %2 = vector.load %arg1[%c0_2, %c0_3, %c0_4] : memref<2x8x2xf32, #tpu.memory_space<vmem>>, vector<2x8x2xf32>
    %3 = vector.shape_cast %2 : vector<2x8x2xf32> to vector<16x2xf32>
    %c0_5 = arith.constant 0 : index
    %c0_6 = arith.constant 0 : index
    %4 = vector.load %arg2[%c0_5, %c0_6] : memref<8x8xf32, #tpu.memory_space<vmem>>, vector<8x8xf32>
    %c0_7 = arith.constant 0 : index
    %c0_8 = arith.constant 0 : index
    %5 = vector.load %arg3[%c0_7, %c0_8] : memref<472x128xf32, #tpu.memory_space<vmem>>, vector<16x32xf32>
    %cst = arith.constant dense<0.000000e+00> : vector<16x32xf32>
    %6 = tpu.matmul %1, %5, %cst {dimension_numbers = #tpu.dot_dimension_numbers<[1], [0], [0], [1], [0, 0, 1, 1], [], []>} : vector<16x16xf32>, vector<16x32xf32>, vector<16x32xf32> -> vector<16x32xf32>
    %c0_9 = arith.constant 0 : index
    %c0_10 = arith.constant 0 : index
    %7 = vector.load %arg4[%c0_9, %c0_10] : memref<24x128xf32, #tpu.memory_space<vmem>>, vector<1x32xf32>
    %8 = vector.broadcast %7 : vector<1x32xf32> to vector<16x32xf32>
    %9 = arith.addf %6, %8 : vector<16x32xf32>
    %c0_11 = arith.constant 0 : index
    %10 = memref.load %arg5[%c0_11] : memref<4xf32, #tpu.memory_space<smem>>
    %cst_12 = arith.constant 0.000000e+00 : f32
    %11 = vector.broadcast %cst_12 : f32 to vector<16x32xf32>
    %12 = arith.cmpf ogt, %9, %11 : vector<16x32xf32>
    %13 = vector.broadcast %10 : f32 to vector<16x32xf32>
    %14 = arith.mulf %13, %9 : vector<16x32xf32>
    %15 = arith.select %12, %9, %14 : vector<16x32xi1>, vector<16x32xf32>
    %c16 = arith.constant 16 : index
    %c0_13 = arith.constant 0 : index
    %16 = vector.load %arg3[%c16, %c0_13] : memref<472x128xf32, #tpu.memory_space<vmem>>, vector<32x32xf32>
    %cst_14 = arith.constant dense<0.000000e+00> : vector<16x32xf32>
    %17 = tpu.matmul %15, %16, %cst_14 {dimension_numbers = #tpu.dot_dimension_numbers<[1], [0], [0], [1], [0, 0, 1, 1], [], []>} : vector<16x32xf32>, vector<32x32xf32>, vector<16x32xf32> -> vector<16x32xf32>
    %c1 = arith.constant 1 : index
    %c0_15 = arith.constant 0 : index
    %18 = vector.load %arg4[%c1, %c0_15] : memref<24x128xf32, #tpu.memory_space<vmem>>, vector<1x32xf32>
    %19 = vector.broadcast %18 : vector<1x32xf32> to vector<16x32xf32>
    %20 = arith.addf %17, %19 : vector<16x32xf32>
    %c1_16 = arith.constant 1 : index
    %21 = memref.load %arg5[%c1_16] : memref<4xf32, #tpu.memory_space<smem>>
    %cst_17 = arith.constant 0.000000e+00 : f32
    %22 = vector.broadcast %cst_17 : f32 to vector<16x32xf32>
    %23 = arith.cmpf ogt, %20, %22 : vector<16x32xf32>
    %24 = vector.broadcast %21 : f32 to vector<16x32xf32>
    %25 = arith.mulf %24, %20 : vector<16x32xf32>
    %26 = arith.select %23, %20, %25 : vector<16x32xi1>, vector<16x32xf32>
    %c48 = arith.constant 48 : index
    %c0_18 = arith.constant 0 : index
    %27 = vector.load %arg3[%c48, %c0_18] : memref<472x128xf32, #tpu.memory_space<vmem>>, vector<2x32xf32>
    %cst_19 = arith.constant dense<0.000000e+00> : vector<16x32xf32>
    %28 = tpu.matmul %3, %27, %cst_19 {dimension_numbers = #tpu.dot_dimension_numbers<[1], [0], [0], [1], [0, 0, 1, 1], [], []>} : vector<16x2xf32>, vector<2x32xf32>, vector<16x32xf32> -> vector<16x32xf32>
    %c2 = arith.constant 2 : index
    %c0_20 = arith.constant 0 : index
    %29 = vector.load %arg4[%c2, %c0_20] : memref<24x128xf32, #tpu.memory_space<vmem>>, vector<1x32xf32>
    %30 = vector.broadcast %29 : vector<1x32xf32> to vector<16x32xf32>
    %31 = arith.addf %28, %30 : vector<16x32xf32>
    %c2_21 = arith.constant 2 : index
    %32 = memref.load %arg5[%c2_21] : memref<4xf32, #tpu.memory_space<smem>>
    %cst_22 = arith.constant 0.000000e+00 : f32
    %33 = vector.broadcast %cst_22 : f32 to vector<16x32xf32>
    %34 = arith.cmpf ogt, %31, %33 : vector<16x32xf32>
    %35 = vector.broadcast %32 : f32 to vector<16x32xf32>
    %36 = arith.mulf %35, %31 : vector<16x32xf32>
    %37 = arith.select %34, %31, %36 : vector<16x32xi1>, vector<16x32xf32>
    %c56 = arith.constant 56 : index
    %c0_23 = arith.constant 0 : index
    %38 = vector.load %arg3[%c56, %c0_23] : memref<472x128xf32, #tpu.memory_space<vmem>>, vector<32x32xf32>
    %cst_24 = arith.constant dense<0.000000e+00> : vector<16x32xf32>
    %39 = tpu.matmul %37, %38, %cst_24 {dimension_numbers = #tpu.dot_dimension_numbers<[1], [0], [0], [1], [0, 0, 1, 1], [], []>} : vector<16x32xf32>, vector<32x32xf32>, vector<16x32xf32> -> vector<16x32xf32>
    %c3 = arith.constant 3 : index
    %c0_25 = arith.constant 0 : index
    %40 = vector.load %arg4[%c3, %c0_25] : memref<24x128xf32, #tpu.memory_space<vmem>>, vector<1x32xf32>
    %41 = vector.broadcast %40 : vector<1x32xf32> to vector<16x32xf32>
    %42 = arith.addf %39, %41 : vector<16x32xf32>
    %43 = arith.addf %26, %42 : vector<16x32xf32>
    %c88 = arith.constant 88 : index
    %c0_26 = arith.constant 0 : index
    %44 = vector.load %arg3[%c88, %c0_26] : memref<472x128xf32, #tpu.memory_space<vmem>>, vector<32x96xf32>
    %c120 = arith.constant 120 : index
    %c0_27 = arith.constant 0 : index
    %45 = vector.load %arg3[%c120, %c0_27] : memref<472x128xf32, #tpu.memory_space<vmem>>, vector<32x32xf32>
    %c152 = arith.constant 152 : index
    %c0_28 = arith.constant 0 : index
    %46 = vector.load %arg3[%c152, %c0_28] : memref<472x128xf32, #tpu.memory_space<vmem>>, vector<32x64xf32>
    %c184 = arith.constant 184 : index
    %c0_29 = arith.constant 0 : index
    %47 = vector.load %arg3[%c184, %c0_29] : memref<472x128xf32, #tpu.memory_space<vmem>>, vector<64x32xf32>
    %cst_30 = arith.constant dense<0.000000e+00> : vector<16x96xf32>
    %48 = tpu.matmul %43, %44, %cst_30 {dimension_numbers = #tpu.dot_dimension_numbers<[1], [0], [0], [1], [0, 0, 1, 1], [], []>} : vector<16x32xf32>, vector<32x96xf32>, vector<16x96xf32> -> vector<16x96xf32>
    %c4 = arith.constant 4 : index
    %c0_31 = arith.constant 0 : index
    %49 = vector.load %arg4[%c4, %c0_31] : memref<24x128xf32, #tpu.memory_space<vmem>>, vector<1x96xf32>
    %50 = vector.broadcast %49 : vector<1x96xf32> to vector<16x96xf32>
    %51 = arith.addf %48, %50 : vector<16x96xf32>
    %52 = vector.extract_strided_slice %51 {offsets = [0, 0], sizes = [8, 96], strides = [1, 1]} : vector<16x96xf32> to vector<8x96xf32>
    %cst_32 = arith.constant 0.000000e+00 : f32
    %53 = vector.broadcast %cst_32 : f32 to vector<8x32xf32>
    %54 = vector.extract_strided_slice %52 {offsets = [0, 0], sizes = [8, 16], strides = [1, 1]} : vector<8x96xf32> to vector<8x16xf32>
    %55 = vector.extract_strided_slice %52 {offsets = [0, 32], sizes = [8, 16], strides = [1, 1]} : vector<8x96xf32> to vector<8x16xf32>
    %56 = vector.extract_strided_slice %52 {offsets = [0, 64], sizes = [8, 16], strides = [1, 1]} : vector<8x96xf32> to vector<8x16xf32>
    %cst_33 = arith.constant dense<0.000000e+00> : vector<8x8xf32>
    %57 = tpu.matmul %54, %55, %cst_33 {dimension_numbers = #tpu.dot_dimension_numbers<[1], [1], [0], [0], [0, 0, 1, 0], [], []>} : vector<8x16xf32>, vector<8x16xf32>, vector<8x8xf32> -> vector<8x8xf32>
    %cst_34 = arith.constant 2.500000e-01 : f32
    %58 = vector.broadcast %cst_34 : f32 to vector<8x8xf32>
    %59 = arith.mulf %57, %58 : vector<8x8xf32>
    %60 = arith.addf %59, %4 : vector<8x8xf32>
    %cst_35 = arith.constant dense<0xFF800000> : vector<8xf32>
    %61 = vector.multi_reduction <maximumf>, %60, %cst_35 [1] : vector<8x8xf32> to vector<8xf32>
    %62 = vector.shape_cast %61 : vector<8xf32> to vector<8x1xf32>
    %63 = vector.broadcast %62 : vector<8x1xf32> to vector<8x8xf32>
    %64 = arith.subf %60, %63 : vector<8x8xf32>
    %65 = math.exp %64 : vector<8x8xf32>
    %cst_36 = arith.constant dense<0.000000e+00> : vector<8xf32>
    %66 = vector.multi_reduction <add>, %65, %cst_36 [1] : vector<8x8xf32> to vector<8xf32>
    %67 = vector.shape_cast %66 : vector<8xf32> to vector<8x1xf32>
    %68 = tpu.reciprocal %67 {approx = true} : vector<8x1xf32> -> vector<8x1xf32>
    %69 = vector.broadcast %68 : vector<8x1xf32> to vector<8x8xf32>
    %70 = arith.mulf %65, %69 : vector<8x8xf32>
    %cst_37 = arith.constant dense<0.000000e+00> : vector<8x16xf32>
    %71 = tpu.matmul %70, %56, %cst_37 {dimension_numbers = #tpu.dot_dimension_numbers<[1], [0], [0], [1], [0, 0, 1, 1], [], []>} : vector<8x8xf32>, vector<8x16xf32>, vector<8x16xf32> -> vector<8x16xf32>
    %72 = vector.extract_strided_slice %45 {offsets = [0, 0], sizes = [16, 32], strides = [1, 1]} : vector<32x32xf32> to vector<16x32xf32>
    %cst_38 = arith.constant dense<0.000000e+00> : vector<8x32xf32>
    %73 = tpu.matmul %71, %72, %cst_38 {dimension_numbers = #tpu.dot_dimension_numbers<[1], [0], [0], [1], [0, 0, 1, 1], [], []>} : vector<8x16xf32>, vector<16x32xf32>, vector<8x32xf32> -> vector<8x32xf32>
    %74 = arith.addf %53, %73 : vector<8x32xf32>
    %75 = vector.extract_strided_slice %52 {offsets = [0, 16], sizes = [8, 16], strides = [1, 1]} : vector<8x96xf32> to vector<8x16xf32>
    %76 = vector.extract_strided_slice %52 {offsets = [0, 48], sizes = [8, 16], strides = [1, 1]} : vector<8x96xf32> to vector<8x16xf32>
    %77 = vector.extract_strided_slice %52 {offsets = [0, 80], sizes = [8, 16], strides = [1, 1]} : vector<8x96xf32> to vector<8x16xf32>
    %cst_39 = arith.constant dense<0.000000e+00> : vector<8x8xf32>
    %78 = tpu.matmul %75, %76, %cst_39 {dimension_numbers = #tpu.dot_dimension_numbers<[1], [1], [0], [0], [0, 0, 1, 0], [], []>} : vector<8x16xf32>, vector<8x16xf32>, vector<8x8xf32> -> vector<8x8xf32>
    %cst_40 = arith.constant 2.500000e-01 : f32
    %79 = vector.broadcast %cst_40 : f32 to vector<8x8xf32>
    %80 = arith.mulf %78, %79 : vector<8x8xf32>
    %81 = arith.addf %80, %4 : vector<8x8xf32>
    %cst_41 = arith.constant dense<0xFF800000> : vector<8xf32>
    %82 = vector.multi_reduction <maximumf>, %81, %cst_41 [1] : vector<8x8xf32> to vector<8xf32>
    %83 = vector.shape_cast %82 : vector<8xf32> to vector<8x1xf32>
    %84 = vector.broadcast %83 : vector<8x1xf32> to vector<8x8xf32>
    %85 = arith.subf %81, %84 : vector<8x8xf32>
    %86 = math.exp %85 : vector<8x8xf32>
    %cst_42 = arith.constant dense<0.000000e+00> : vector<8xf32>
    %87 = vector.multi_reduction <add>, %86, %cst_42 [1] : vector<8x8xf32> to vector<8xf32>
    %88 = vector.shape_cast %87 : vector<8xf32> to vector<8x1xf32>
    %89 = tpu.reciprocal %88 {approx = true} : vector<8x1xf32> -> vector<8x1xf32>
    %90 = vector.broadcast %89 : vector<8x1xf32> to vector<8x8xf32>
    %91 = arith.mulf %86, %90 : vector<8x8xf32>
    %cst_43 = arith.constant dense<0.000000e+00> : vector<8x16xf32>
    %92 = tpu.matmul %91, %77, %cst_43 {dimension_numbers = #tpu.dot_dimension_numbers<[1], [0], [0], [1], [0, 0, 1, 1], [], []>} : vector<8x8xf32>, vector<8x16xf32>, vector<8x16xf32> -> vector<8x16xf32>
    %93 = vector.extract_strided_slice %45 {offsets = [16, 0], sizes = [16, 32], strides = [1, 1]} : vector<32x32xf32> to vector<16x32xf32>
    %cst_44 = arith.constant dense<0.000000e+00> : vector<8x32xf32>
    %94 = tpu.matmul %92, %93, %cst_44 {dimension_numbers = #tpu.dot_dimension_numbers<[1], [0], [0], [1], [0, 0, 1, 1], [], []>} : vector<8x16xf32>, vector<16x32xf32>, vector<8x32xf32> -> vector<8x32xf32>
    %95 = arith.addf %74, %94 : vector<8x32xf32>
    %96 = vector.extract_strided_slice %51 {offsets = [8, 0], sizes = [8, 96], strides = [1, 1]} : vector<16x96xf32> to vector<8x96xf32>
    %cst_45 = arith.constant 0.000000e+00 : f32
    %97 = vector.broadcast %cst_45 : f32 to vector<8x32xf32>
    %98 = vector.extract_strided_slice %96 {offsets = [0, 0], sizes = [8, 16], strides = [1, 1]} : vector<8x96xf32> to vector<8x16xf32>
    %99 = vector.extract_strided_slice %96 {offsets = [0, 32], sizes = [8, 16], strides = [1, 1]} : vector<8x96xf32> to vector<8x16xf32>
    %100 = vector.extract_strided_slice %96 {offsets = [0, 64], sizes = [8, 16], strides = [1, 1]} : vector<8x96xf32> to vector<8x16xf32>
    %cst_46 = arith.constant dense<0.000000e+00> : vector<8x8xf32>
    %101 = tpu.matmul %98, %99, %cst_46 {dimension_numbers = #tpu.dot_dimension_numbers<[1], [1], [0], [0], [0, 0, 1, 0], [], []>} : vector<8x16xf32>, vector<8x16xf32>, vector<8x8xf32> -> vector<8x8xf32>
    %cst_47 = arith.constant 2.500000e-01 : f32
    %102 = vector.broadcast %cst_47 : f32 to vector<8x8xf32>
    %103 = arith.mulf %101, %102 : vector<8x8xf32>
    %104 = arith.addf %103, %4 : vector<8x8xf32>
    %cst_48 = arith.constant dense<0xFF800000> : vector<8xf32>
    %105 = vector.multi_reduction <maximumf>, %104, %cst_48 [1] : vector<8x8xf32> to vector<8xf32>
    %106 = vector.shape_cast %105 : vector<8xf32> to vector<8x1xf32>
    %107 = vector.broadcast %106 : vector<8x1xf32> to vector<8x8xf32>
    %108 = arith.subf %104, %107 : vector<8x8xf32>
    %109 = math.exp %108 : vector<8x8xf32>
    %cst_49 = arith.constant dense<0.000000e+00> : vector<8xf32>
    %110 = vector.multi_reduction <add>, %109, %cst_49 [1] : vector<8x8xf32> to vector<8xf32>
    %111 = vector.shape_cast %110 : vector<8xf32> to vector<8x1xf32>
    %112 = tpu.reciprocal %111 {approx = true} : vector<8x1xf32> -> vector<8x1xf32>
    %113 = vector.broadcast %112 : vector<8x1xf32> to vector<8x8xf32>
    %114 = arith.mulf %109, %113 : vector<8x8xf32>
    %cst_50 = arith.constant dense<0.000000e+00> : vector<8x16xf32>
    %115 = tpu.matmul %114, %100, %cst_50 {dimension_numbers = #tpu.dot_dimension_numbers<[1], [0], [0], [1], [0, 0, 1, 1], [], []>} : vector<8x8xf32>, vector<8x16xf32>, vector<8x16xf32> -> vector<8x16xf32>
    %116 = vector.extract_strided_slice %45 {offsets = [0, 0], sizes = [16, 32], strides = [1, 1]} : vector<32x32xf32> to vector<16x32xf32>
    %cst_51 = arith.constant dense<0.000000e+00> : vector<8x32xf32>
    %117 = tpu.matmul %115, %116, %cst_51 {dimension_numbers = #tpu.dot_dimension_numbers<[1], [0], [0], [1], [0, 0, 1, 1], [], []>} : vector<8x16xf32>, vector<16x32xf32>, vector<8x32xf32> -> vector<8x32xf32>
    %118 = arith.addf %97, %117 : vector<8x32xf32>
    %119 = vector.extract_strided_slice %96 {offsets = [0, 16], sizes = [8, 16], strides = [1, 1]} : vector<8x96xf32> to vector<8x16xf32>
    %120 = vector.extract_strided_slice %96 {offsets = [0, 48], sizes = [8, 16], strides = [1, 1]} : vector<8x96xf32> to vector<8x16xf32>
    %121 = vector.extract_strided_slice %96 {offsets = [0, 80], sizes = [8, 16], strides = [1, 1]} : vector<8x96xf32> to vector<8x16xf32>
    %cst_52 = arith.constant dense<0.000000e+00> : vector<8x8xf32>
    %122 = tpu.matmul %119, %120, %cst_52 {dimension_numbers = #tpu.dot_dimension_numbers<[1], [1], [0], [0], [0, 0, 1, 0], [], []>} : vector<8x16xf32>, vector<8x16xf32>, vector<8x8xf32> -> vector<8x8xf32>
    %cst_53 = arith.constant 2.500000e-01 : f32
    %123 = vector.broadcast %cst_53 : f32 to vector<8x8xf32>
    %124 = arith.mulf %122, %123 : vector<8x8xf32>
    %125 = arith.addf %124, %4 : vector<8x8xf32>
    %cst_54 = arith.constant dense<0xFF800000> : vector<8xf32>
    %126 = vector.multi_reduction <maximumf>, %125, %cst_54 [1] : vector<8x8xf32> to vector<8xf32>
    %127 = vector.shape_cast %126 : vector<8xf32> to vector<8x1xf32>
    %128 = vector.broadcast %127 : vector<8x1xf32> to vector<8x8xf32>
    %129 = arith.subf %125, %128 : vector<8x8xf32>
    %130 = math.exp %129 : vector<8x8xf32>
    %cst_55 = arith.constant dense<0.000000e+00> : vector<8xf32>
    %131 = vector.multi_reduction <add>, %130, %cst_55 [1] : vector<8x8xf32> to vector<8xf32>
    %132 = vector.shape_cast %131 : vector<8xf32> to vector<8x1xf32>
    %133 = tpu.reciprocal %132 {approx = true} : vector<8x1xf32> -> vector<8x1xf32>
    %134 = vector.broadcast %133 : vector<8x1xf32> to vector<8x8xf32>
    %135 = arith.mulf %130, %134 : vector<8x8xf32>
    %cst_56 = arith.constant dense<0.000000e+00> : vector<8x16xf32>
    %136 = tpu.matmul %135, %121, %cst_56 {dimension_numbers = #tpu.dot_dimension_numbers<[1], [0], [0], [1], [0, 0, 1, 1], [], []>} : vector<8x8xf32>, vector<8x16xf32>, vector<8x16xf32> -> vector<8x16xf32>
    %137 = vector.extract_strided_slice %45 {offsets = [16, 0], sizes = [16, 32], strides = [1, 1]} : vector<32x32xf32> to vector<16x32xf32>
    %cst_57 = arith.constant dense<0.000000e+00> : vector<8x32xf32>
    %138 = tpu.matmul %136, %137, %cst_57 {dimension_numbers = #tpu.dot_dimension_numbers<[1], [0], [0], [1], [0, 0, 1, 1], [], []>} : vector<8x16xf32>, vector<16x32xf32>, vector<8x32xf32> -> vector<8x32xf32>
    %139 = arith.addf %118, %138 : vector<8x32xf32>
    %140 = tpu.concatenate %95, %139 in 0 : vector<8x32xf32>, vector<8x32xf32> -> vector<16x32xf32>
    %c5 = arith.constant 5 : index
    %c0_58 = arith.constant 0 : index
    %141 = vector.load %arg4[%c5, %c0_58] : memref<24x128xf32, #tpu.memory_space<vmem>>, vector<1x32xf32>
    %142 = vector.broadcast %141 : vector<1x32xf32> to vector<16x32xf32>
    %143 = arith.addf %140, %142 : vector<16x32xf32>
    %144 = arith.addf %43, %143 : vector<16x32xf32>
    %c6 = arith.constant 6 : index
    %c0_59 = arith.constant 0 : index
    %145 = vector.load %arg4[%c6, %c0_59] : memref<24x128xf32, #tpu.memory_space<vmem>>, vector<1x32xf32>
    %c7 = arith.constant 7 : index
    %c0_60 = arith.constant 0 : index
    %146 = vector.load %arg4[%c7, %c0_60] : memref<24x128xf32, #tpu.memory_space<vmem>>, vector<1x32xf32>
    %cst_61 = arith.constant dense<0.000000e+00> : vector<16xf32>
    %147 = vector.multi_reduction <add>, %144, %cst_61 [1] : vector<16x32xf32> to vector<16xf32>
    %148 = vector.shape_cast %147 : vector<16xf32> to vector<16x1xf32>
    %cst_62 = arith.constant 3.200000e+01 : f32
    %149 = vector.broadcast %cst_62 : f32 to vector<16x1xf32>
    %150 = arith.divf %148, %149 : vector<16x1xf32>
    %151 = vector.broadcast %150 : vector<16x1xf32> to vector<16x32xf32>
    %152 = arith.subf %144, %151 : vector<16x32xf32>
    %153 = arith.mulf %152, %152 : vector<16x32xf32>
    %cst_63 = arith.constant dense<0.000000e+00> : vector<16xf32>
    %154 = vector.multi_reduction <add>, %153, %cst_63 [1] : vector<16x32xf32> to vector<16xf32>
    %155 = vector.shape_cast %154 : vector<16xf32> to vector<16x1xf32>
    %cst_64 = arith.constant 3.200000e+01 : f32
    %156 = vector.broadcast %cst_64 : f32 to vector<16x1xf32>
    %157 = arith.divf %155, %156 : vector<16x1xf32>
    %cst_65 = arith.constant 9.99999974E-6 : f32
    %158 = vector.broadcast %cst_65 : f32 to vector<16x1xf32>
    %159 = arith.addf %157, %158 : vector<16x1xf32>
    %160 = math.rsqrt %159 : vector<16x1xf32>
    %161 = vector.broadcast %160 : vector<16x1xf32> to vector<16x32xf32>
    %162 = arith.mulf %152, %161 : vector<16x32xf32>
    %163 = vector.broadcast %145 : vector<1x32xf32> to vector<16x32xf32>
    %164 = arith.mulf %162, %163 : vector<16x32xf32>
    %165 = vector.broadcast %146 : vector<1x32xf32> to vector<16x32xf32>
    %166 = arith.addf %164, %165 : vector<16x32xf32>
    %cst_66 = arith.constant dense<0.000000e+00> : vector<16x64xf32>
    %167 = tpu.matmul %166, %46, %cst_66 {dimension_numbers = #tpu.dot_dimension_numbers<[1], [0], [0], [1], [0, 0, 1, 1], [], []>} : vector<16x32xf32>, vector<32x64xf32>, vector<16x64xf32> -> vector<16x64xf32>
    %c8 = arith.constant 8 : index
    %c0_67 = arith.constant 0 : index
    %168 = vector.load %arg4[%c8, %c0_67] : memref<24x128xf32, #tpu.memory_space<vmem>>, vector<1x64xf32>
    %169 = vector.broadcast %168 : vector<1x64xf32> to vector<16x64xf32>
    %170 = arith.addf %167, %169 : vector<16x64xf32>
    %cst_68 = arith.constant 0.000000e+00 : f32
    %171 = vector.broadcast %cst_68 : f32 to vector<16x64xf32>
    %172 = arith.maximumf %170, %171 : vector<16x64xf32>
    %cst_69 = arith.constant dense<0.000000e+00> : vector<16x32xf32>
    %173 = tpu.matmul %172, %47, %cst_69 {dimension_numbers = #tpu.dot_dimension_numbers<[1], [0], [0], [1], [0, 0, 1, 1], [], []>} : vector<16x64xf32>, vector<64x32xf32>, vector<16x32xf32> -> vector<16x32xf32>
    %c9 = arith.constant 9 : index
    %c0_70 = arith.constant 0 : index
    %174 = vector.load %arg4[%c9, %c0_70] : memref<24x128xf32, #tpu.memory_space<vmem>>, vector<1x32xf32>
    %175 = vector.broadcast %174 : vector<1x32xf32> to vector<16x32xf32>
    %176 = arith.addf %173, %175 : vector<16x32xf32>
    %177 = arith.addf %166, %176 : vector<16x32xf32>
    %c10 = arith.constant 10 : index
    %c0_71 = arith.constant 0 : index
    %178 = vector.load %arg4[%c10, %c0_71] : memref<24x128xf32, #tpu.memory_space<vmem>>, vector<1x32xf32>
    %c11 = arith.constant 11 : index
    %c0_72 = arith.constant 0 : index
    %179 = vector.load %arg4[%c11, %c0_72] : memref<24x128xf32, #tpu.memory_space<vmem>>, vector<1x32xf32>
    %cst_73 = arith.constant dense<0.000000e+00> : vector<16xf32>
    %180 = vector.multi_reduction <add>, %177, %cst_73 [1] : vector<16x32xf32> to vector<16xf32>
    %181 = vector.shape_cast %180 : vector<16xf32> to vector<16x1xf32>
    %cst_74 = arith.constant 3.200000e+01 : f32
    %182 = vector.broadcast %cst_74 : f32 to vector<16x1xf32>
    %183 = arith.divf %181, %182 : vector<16x1xf32>
    %184 = vector.broadcast %183 : vector<16x1xf32> to vector<16x32xf32>
    %185 = arith.subf %177, %184 : vector<16x32xf32>
    %186 = arith.mulf %185, %185 : vector<16x32xf32>
    %cst_75 = arith.constant dense<0.000000e+00> : vector<16xf32>
    %187 = vector.multi_reduction <add>, %186, %cst_75 [1] : vector<16x32xf32> to vector<16xf32>
    %188 = vector.shape_cast %187 : vector<16xf32> to vector<16x1xf32>
    %cst_76 = arith.constant 3.200000e+01 : f32
    %189 = vector.broadcast %cst_76 : f32 to vector<16x1xf32>
    %190 = arith.divf %188, %189 : vector<16x1xf32>
    %cst_77 = arith.constant 9.99999974E-6 : f32
    %191 = vector.broadcast %cst_77 : f32 to vector<16x1xf32>
    %192 = arith.addf %190, %191 : vector<16x1xf32>
    %193 = math.rsqrt %192 : vector<16x1xf32>
    %194 = vector.broadcast %193 : vector<16x1xf32> to vector<16x32xf32>
    %195 = arith.mulf %185, %194 : vector<16x32xf32>
    %196 = vector.broadcast %178 : vector<1x32xf32> to vector<16x32xf32>
    %197 = arith.mulf %195, %196 : vector<16x32xf32>
    %198 = vector.broadcast %179 : vector<1x32xf32> to vector<16x32xf32>
    %199 = arith.addf %197, %198 : vector<16x32xf32>
    %c248 = arith.constant 248 : index
    %c0_78 = arith.constant 0 : index
    %200 = vector.load %arg3[%c248, %c0_78] : memref<472x128xf32, #tpu.memory_space<vmem>>, vector<32x96xf32>
    %c280 = arith.constant 280 : index
    %c0_79 = arith.constant 0 : index
    %201 = vector.load %arg3[%c280, %c0_79] : memref<472x128xf32, #tpu.memory_space<vmem>>, vector<32x32xf32>
    %c312 = arith.constant 312 : index
    %c0_80 = arith.constant 0 : index
    %202 = vector.load %arg3[%c312, %c0_80] : memref<472x128xf32, #tpu.memory_space<vmem>>, vector<32x64xf32>
    %c344 = arith.constant 344 : index
    %c0_81 = arith.constant 0 : index
    %203 = vector.load %arg3[%c344, %c0_81] : memref<472x128xf32, #tpu.memory_space<vmem>>, vector<64x32xf32>
    %cst_82 = arith.constant dense<0.000000e+00> : vector<16x96xf32>
    %204 = tpu.matmul %199, %200, %cst_82 {dimension_numbers = #tpu.dot_dimension_numbers<[1], [0], [0], [1], [0, 0, 1, 1], [], []>} : vector<16x32xf32>, vector<32x96xf32>, vector<16x96xf32> -> vector<16x96xf32>
    %c12 = arith.constant 12 : index
    %c0_83 = arith.constant 0 : index
    %205 = vector.load %arg4[%c12, %c0_83] : memref<24x128xf32, #tpu.memory_space<vmem>>, vector<1x96xf32>
    %206 = vector.broadcast %205 : vector<1x96xf32> to vector<16x96xf32>
    %207 = arith.addf %204, %206 : vector<16x96xf32>
    %208 = vector.extract_strided_slice %207 {offsets = [0, 0], sizes = [8, 96], strides = [1, 1]} : vector<16x96xf32> to vector<8x96xf32>
    %cst_84 = arith.constant 0.000000e+00 : f32
    %209 = vector.broadcast %cst_84 : f32 to vector<8x32xf32>
    %210 = vector.extract_strided_slice %208 {offsets = [0, 0], sizes = [8, 16], strides = [1, 1]} : vector<8x96xf32> to vector<8x16xf32>
    %211 = vector.extract_strided_slice %208 {offsets = [0, 32], sizes = [8, 16], strides = [1, 1]} : vector<8x96xf32> to vector<8x16xf32>
    %212 = vector.extract_strided_slice %208 {offsets = [0, 64], sizes = [8, 16], strides = [1, 1]} : vector<8x96xf32> to vector<8x16xf32>
    %cst_85 = arith.constant dense<0.000000e+00> : vector<8x8xf32>
    %213 = tpu.matmul %210, %211, %cst_85 {dimension_numbers = #tpu.dot_dimension_numbers<[1], [1], [0], [0], [0, 0, 1, 0], [], []>} : vector<8x16xf32>, vector<8x16xf32>, vector<8x8xf32> -> vector<8x8xf32>
    %cst_86 = arith.constant 2.500000e-01 : f32
    %214 = vector.broadcast %cst_86 : f32 to vector<8x8xf32>
    %215 = arith.mulf %213, %214 : vector<8x8xf32>
    %216 = arith.addf %215, %4 : vector<8x8xf32>
    %cst_87 = arith.constant dense<0xFF800000> : vector<8xf32>
    %217 = vector.multi_reduction <maximumf>, %216, %cst_87 [1] : vector<8x8xf32> to vector<8xf32>
    %218 = vector.shape_cast %217 : vector<8xf32> to vector<8x1xf32>
    %219 = vector.broadcast %218 : vector<8x1xf32> to vector<8x8xf32>
    %220 = arith.subf %216, %219 : vector<8x8xf32>
    %221 = math.exp %220 : vector<8x8xf32>
    %cst_88 = arith.constant dense<0.000000e+00> : vector<8xf32>
    %222 = vector.multi_reduction <add>, %221, %cst_88 [1] : vector<8x8xf32> to vector<8xf32>
    %223 = vector.shape_cast %222 : vector<8xf32> to vector<8x1xf32>
    %224 = tpu.reciprocal %223 {approx = true} : vector<8x1xf32> -> vector<8x1xf32>
    %225 = vector.broadcast %224 : vector<8x1xf32> to vector<8x8xf32>
    %226 = arith.mulf %221, %225 : vector<8x8xf32>
    %cst_89 = arith.constant dense<0.000000e+00> : vector<8x16xf32>
    %227 = tpu.matmul %226, %212, %cst_89 {dimension_numbers = #tpu.dot_dimension_numbers<[1], [0], [0], [1], [0, 0, 1, 1], [], []>} : vector<8x8xf32>, vector<8x16xf32>, vector<8x16xf32> -> vector<8x16xf32>
    %228 = vector.extract_strided_slice %201 {offsets = [0, 0], sizes = [16, 32], strides = [1, 1]} : vector<32x32xf32> to vector<16x32xf32>
    %cst_90 = arith.constant dense<0.000000e+00> : vector<8x32xf32>
    %229 = tpu.matmul %227, %228, %cst_90 {dimension_numbers = #tpu.dot_dimension_numbers<[1], [0], [0], [1], [0, 0, 1, 1], [], []>} : vector<8x16xf32>, vector<16x32xf32>, vector<8x32xf32> -> vector<8x32xf32>
    %230 = arith.addf %209, %229 : vector<8x32xf32>
    %231 = vector.extract_strided_slice %208 {offsets = [0, 16], sizes = [8, 16], strides = [1, 1]} : vector<8x96xf32> to vector<8x16xf32>
    %232 = vector.extract_strided_slice %208 {offsets = [0, 48], sizes = [8, 16], strides = [1, 1]} : vector<8x96xf32> to vector<8x16xf32>
    %233 = vector.extract_strided_slice %208 {offsets = [0, 80], sizes = [8, 16], strides = [1, 1]} : vector<8x96xf32> to vector<8x16xf32>
    %cst_91 = arith.constant dense<0.000000e+00> : vector<8x8xf32>
    %234 = tpu.matmul %231, %232, %cst_91 {dimension_numbers = #tpu.dot_dimension_numbers<[1], [1], [0], [0], [0, 0, 1, 0], [], []>} : vector<8x16xf32>, vector<8x16xf32>, vector<8x8xf32> -> vector<8x8xf32>
    %cst_92 = arith.constant 2.500000e-01 : f32
    %235 = vector.broadcast %cst_92 : f32 to vector<8x8xf32>
    %236 = arith.mulf %234, %235 : vector<8x8xf32>
    %237 = arith.addf %236, %4 : vector<8x8xf32>
    %cst_93 = arith.constant dense<0xFF800000> : vector<8xf32>
    %238 = vector.multi_reduction <maximumf>, %237, %cst_93 [1] : vector<8x8xf32> to vector<8xf32>
    %239 = vector.shape_cast %238 : vector<8xf32> to vector<8x1xf32>
    %240 = vector.broadcast %239 : vector<8x1xf32> to vector<8x8xf32>
    %241 = arith.subf %237, %240 : vector<8x8xf32>
    %242 = math.exp %241 : vector<8x8xf32>
    %cst_94 = arith.constant dense<0.000000e+00> : vector<8xf32>
    %243 = vector.multi_reduction <add>, %242, %cst_94 [1] : vector<8x8xf32> to vector<8xf32>
    %244 = vector.shape_cast %243 : vector<8xf32> to vector<8x1xf32>
    %245 = tpu.reciprocal %244 {approx = true} : vector<8x1xf32> -> vector<8x1xf32>
    %246 = vector.broadcast %245 : vector<8x1xf32> to vector<8x8xf32>
    %247 = arith.mulf %242, %246 : vector<8x8xf32>
    %cst_95 = arith.constant dense<0.000000e+00> : vector<8x16xf32>
    %248 = tpu.matmul %247, %233, %cst_95 {dimension_numbers = #tpu.dot_dimension_numbers<[1], [0], [0], [1], [0, 0, 1, 1], [], []>} : vector<8x8xf32>, vector<8x16xf32>, vector<8x16xf32> -> vector<8x16xf32>
    %249 = vector.extract_strided_slice %201 {offsets = [16, 0], sizes = [16, 32], strides = [1, 1]} : vector<32x32xf32> to vector<16x32xf32>
    %cst_96 = arith.constant dense<0.000000e+00> : vector<8x32xf32>
    %250 = tpu.matmul %248, %249, %cst_96 {dimension_numbers = #tpu.dot_dimension_numbers<[1], [0], [0], [1], [0, 0, 1, 1], [], []>} : vector<8x16xf32>, vector<16x32xf32>, vector<8x32xf32> -> vector<8x32xf32>
    %251 = arith.addf %230, %250 : vector<8x32xf32>
    %252 = vector.extract_strided_slice %207 {offsets = [8, 0], sizes = [8, 96], strides = [1, 1]} : vector<16x96xf32> to vector<8x96xf32>
    %cst_97 = arith.constant 0.000000e+00 : f32
    %253 = vector.broadcast %cst_97 : f32 to vector<8x32xf32>
    %254 = vector.extract_strided_slice %252 {offsets = [0, 0], sizes = [8, 16], strides = [1, 1]} : vector<8x96xf32> to vector<8x16xf32>
    %255 = vector.extract_strided_slice %252 {offsets = [0, 32], sizes = [8, 16], strides = [1, 1]} : vector<8x96xf32> to vector<8x16xf32>
    %256 = vector.extract_strided_slice %252 {offsets = [0, 64], sizes = [8, 16], strides = [1, 1]} : vector<8x96xf32> to vector<8x16xf32>
    %cst_98 = arith.constant dense<0.000000e+00> : vector<8x8xf32>
    %257 = tpu.matmul %254, %255, %cst_98 {dimension_numbers = #tpu.dot_dimension_numbers<[1], [1], [0], [0], [0, 0, 1, 0], [], []>} : vector<8x16xf32>, vector<8x16xf32>, vector<8x8xf32> -> vector<8x8xf32>
    %cst_99 = arith.constant 2.500000e-01 : f32
    %258 = vector.broadcast %cst_99 : f32 to vector<8x8xf32>
    %259 = arith.mulf %257, %258 : vector<8x8xf32>
    %260 = arith.addf %259, %4 : vector<8x8xf32>
    %cst_100 = arith.constant dense<0xFF800000> : vector<8xf32>
    %261 = vector.multi_reduction <maximumf>, %260, %cst_100 [1] : vector<8x8xf32> to vector<8xf32>
    %262 = vector.shape_cast %261 : vector<8xf32> to vector<8x1xf32>
    %263 = vector.broadcast %262 : vector<8x1xf32> to vector<8x8xf32>
    %264 = arith.subf %260, %263 : vector<8x8xf32>
    %265 = math.exp %264 : vector<8x8xf32>
    %cst_101 = arith.constant dense<0.000000e+00> : vector<8xf32>
    %266 = vector.multi_reduction <add>, %265, %cst_101 [1] : vector<8x8xf32> to vector<8xf32>
    %267 = vector.shape_cast %266 : vector<8xf32> to vector<8x1xf32>
    %268 = tpu.reciprocal %267 {approx = true} : vector<8x1xf32> -> vector<8x1xf32>
    %269 = vector.broadcast %268 : vector<8x1xf32> to vector<8x8xf32>
    %270 = arith.mulf %265, %269 : vector<8x8xf32>
    %cst_102 = arith.constant dense<0.000000e+00> : vector<8x16xf32>
    %271 = tpu.matmul %270, %256, %cst_102 {dimension_numbers = #tpu.dot_dimension_numbers<[1], [0], [0], [1], [0, 0, 1, 1], [], []>} : vector<8x8xf32>, vector<8x16xf32>, vector<8x16xf32> -> vector<8x16xf32>
    %272 = vector.extract_strided_slice %201 {offsets = [0, 0], sizes = [16, 32], strides = [1, 1]} : vector<32x32xf32> to vector<16x32xf32>
    %cst_103 = arith.constant dense<0.000000e+00> : vector<8x32xf32>
    %273 = tpu.matmul %271, %272, %cst_103 {dimension_numbers = #tpu.dot_dimension_numbers<[1], [0], [0], [1], [0, 0, 1, 1], [], []>} : vector<8x16xf32>, vector<16x32xf32>, vector<8x32xf32> -> vector<8x32xf32>
    %274 = arith.addf %253, %273 : vector<8x32xf32>
    %275 = vector.extract_strided_slice %252 {offsets = [0, 16], sizes = [8, 16], strides = [1, 1]} : vector<8x96xf32> to vector<8x16xf32>
    %276 = vector.extract_strided_slice %252 {offsets = [0, 48], sizes = [8, 16], strides = [1, 1]} : vector<8x96xf32> to vector<8x16xf32>
    %277 = vector.extract_strided_slice %252 {offsets = [0, 80], sizes = [8, 16], strides = [1, 1]} : vector<8x96xf32> to vector<8x16xf32>
    %cst_104 = arith.constant dense<0.000000e+00> : vector<8x8xf32>
    %278 = tpu.matmul %275, %276, %cst_104 {dimension_numbers = #tpu.dot_dimension_numbers<[1], [1], [0], [0], [0, 0, 1, 0], [], []>} : vector<8x16xf32>, vector<8x16xf32>, vector<8x8xf32> -> vector<8x8xf32>
    %cst_105 = arith.constant 2.500000e-01 : f32
    %279 = vector.broadcast %cst_105 : f32 to vector<8x8xf32>
    %280 = arith.mulf %278, %279 : vector<8x8xf32>
    %281 = arith.addf %280, %4 : vector<8x8xf32>
    %cst_106 = arith.constant dense<0xFF800000> : vector<8xf32>
    %282 = vector.multi_reduction <maximumf>, %281, %cst_106 [1] : vector<8x8xf32> to vector<8xf32>
    %283 = vector.shape_cast %282 : vector<8xf32> to vector<8x1xf32>
    %284 = vector.broadcast %283 : vector<8x1xf32> to vector<8x8xf32>
    %285 = arith.subf %281, %284 : vector<8x8xf32>
    %286 = math.exp %285 : vector<8x8xf32>
    %cst_107 = arith.constant dense<0.000000e+00> : vector<8xf32>
    %287 = vector.multi_reduction <add>, %286, %cst_107 [1] : vector<8x8xf32> to vector<8xf32>
    %288 = vector.shape_cast %287 : vector<8xf32> to vector<8x1xf32>
    %289 = tpu.reciprocal %288 {approx = true} : vector<8x1xf32> -> vector<8x1xf32>
    %290 = vector.broadcast %289 : vector<8x1xf32> to vector<8x8xf32>
    %291 = arith.mulf %286, %290 : vector<8x8xf32>
    %cst_108 = arith.constant dense<0.000000e+00> : vector<8x16xf32>
    %292 = tpu.matmul %291, %277, %cst_108 {dimension_numbers = #tpu.dot_dimension_numbers<[1], [0], [0], [1], [0, 0, 1, 1], [], []>} : vector<8x8xf32>, vector<8x16xf32>, vector<8x16xf32> -> vector<8x16xf32>
    %293 = vector.extract_strided_slice %201 {offsets = [16, 0], sizes = [16, 32], strides = [1, 1]} : vector<32x32xf32> to vector<16x32xf32>
    %cst_109 = arith.constant dense<0.000000e+00> : vector<8x32xf32>
    %294 = tpu.matmul %292, %293, %cst_109 {dimension_numbers = #tpu.dot_dimension_numbers<[1], [0], [0], [1], [0, 0, 1, 1], [], []>} : vector<8x16xf32>, vector<16x32xf32>, vector<8x32xf32> -> vector<8x32xf32>
    %295 = arith.addf %274, %294 : vector<8x32xf32>
    %296 = tpu.concatenate %251, %295 in 0 : vector<8x32xf32>, vector<8x32xf32> -> vector<16x32xf32>
    %c13 = arith.constant 13 : index
    %c0_110 = arith.constant 0 : index
    %297 = vector.load %arg4[%c13, %c0_110] : memref<24x128xf32, #tpu.memory_space<vmem>>, vector<1x32xf32>
    %298 = vector.broadcast %297 : vector<1x32xf32> to vector<16x32xf32>
    %299 = arith.addf %296, %298 : vector<16x32xf32>
    %300 = arith.addf %199, %299 : vector<16x32xf32>
    %c14 = arith.constant 14 : index
    %c0_111 = arith.constant 0 : index
    %301 = vector.load %arg4[%c14, %c0_111] : memref<24x128xf32, #tpu.memory_space<vmem>>, vector<1x32xf32>
    %c15 = arith.constant 15 : index
    %c0_112 = arith.constant 0 : index
    %302 = vector.load %arg4[%c15, %c0_112] : memref<24x128xf32, #tpu.memory_space<vmem>>, vector<1x32xf32>
    %cst_113 = arith.constant dense<0.000000e+00> : vector<16xf32>
    %303 = vector.multi_reduction <add>, %300, %cst_113 [1] : vector<16x32xf32> to vector<16xf32>
    %304 = vector.shape_cast %303 : vector<16xf32> to vector<16x1xf32>
    %cst_114 = arith.constant 3.200000e+01 : f32
    %305 = vector.broadcast %cst_114 : f32 to vector<16x1xf32>
    %306 = arith.divf %304, %305 : vector<16x1xf32>
    %307 = vector.broadcast %306 : vector<16x1xf32> to vector<16x32xf32>
    %308 = arith.subf %300, %307 : vector<16x32xf32>
    %309 = arith.mulf %308, %308 : vector<16x32xf32>
    %cst_115 = arith.constant dense<0.000000e+00> : vector<16xf32>
    %310 = vector.multi_reduction <add>, %309, %cst_115 [1] : vector<16x32xf32> to vector<16xf32>
    %311 = vector.shape_cast %310 : vector<16xf32> to vector<16x1xf32>
    %cst_116 = arith.constant 3.200000e+01 : f32
    %312 = vector.broadcast %cst_116 : f32 to vector<16x1xf32>
    %313 = arith.divf %311, %312 : vector<16x1xf32>
    %cst_117 = arith.constant 9.99999974E-6 : f32
    %314 = vector.broadcast %cst_117 : f32 to vector<16x1xf32>
    %315 = arith.addf %313, %314 : vector<16x1xf32>
    %316 = math.rsqrt %315 : vector<16x1xf32>
    %317 = vector.broadcast %316 : vector<16x1xf32> to vector<16x32xf32>
    %318 = arith.mulf %308, %317 : vector<16x32xf32>
    %319 = vector.broadcast %301 : vector<1x32xf32> to vector<16x32xf32>
    %320 = arith.mulf %318, %319 : vector<16x32xf32>
    %321 = vector.broadcast %302 : vector<1x32xf32> to vector<16x32xf32>
    %322 = arith.addf %320, %321 : vector<16x32xf32>
    %cst_118 = arith.constant dense<0.000000e+00> : vector<16x64xf32>
    %323 = tpu.matmul %322, %202, %cst_118 {dimension_numbers = #tpu.dot_dimension_numbers<[1], [0], [0], [1], [0, 0, 1, 1], [], []>} : vector<16x32xf32>, vector<32x64xf32>, vector<16x64xf32> -> vector<16x64xf32>
    %c16_119 = arith.constant 16 : index
    %c0_120 = arith.constant 0 : index
    %324 = vector.load %arg4[%c16_119, %c0_120] : memref<24x128xf32, #tpu.memory_space<vmem>>, vector<1x64xf32>
    %325 = vector.broadcast %324 : vector<1x64xf32> to vector<16x64xf32>
    %326 = arith.addf %323, %325 : vector<16x64xf32>
    %cst_121 = arith.constant 0.000000e+00 : f32
    %327 = vector.broadcast %cst_121 : f32 to vector<16x64xf32>
    %328 = arith.maximumf %326, %327 : vector<16x64xf32>
    %cst_122 = arith.constant dense<0.000000e+00> : vector<16x32xf32>
    %329 = tpu.matmul %328, %203, %cst_122 {dimension_numbers = #tpu.dot_dimension_numbers<[1], [0], [0], [1], [0, 0, 1, 1], [], []>} : vector<16x64xf32>, vector<64x32xf32>, vector<16x32xf32> -> vector<16x32xf32>
    %c17 = arith.constant 17 : index
    %c0_123 = arith.constant 0 : index
    %330 = vector.load %arg4[%c17, %c0_123] : memref<24x128xf32, #tpu.memory_space<vmem>>, vector<1x32xf32>
    %331 = vector.broadcast %330 : vector<1x32xf32> to vector<16x32xf32>
    %332 = arith.addf %329, %331 : vector<16x32xf32>
    %333 = arith.addf %322, %332 : vector<16x32xf32>
    %c18 = arith.constant 18 : index
    %c0_124 = arith.constant 0 : index
    %334 = vector.load %arg4[%c18, %c0_124] : memref<24x128xf32, #tpu.memory_space<vmem>>, vector<1x32xf32>
    %c19 = arith.constant 19 : index
    %c0_125 = arith.constant 0 : index
    %335 = vector.load %arg4[%c19, %c0_125] : memref<24x128xf32, #tpu.memory_space<vmem>>, vector<1x32xf32>
    %cst_126 = arith.constant dense<0.000000e+00> : vector<16xf32>
    %336 = vector.multi_reduction <add>, %333, %cst_126 [1] : vector<16x32xf32> to vector<16xf32>
    %337 = vector.shape_cast %336 : vector<16xf32> to vector<16x1xf32>
    %cst_127 = arith.constant 3.200000e+01 : f32
    %338 = vector.broadcast %cst_127 : f32 to vector<16x1xf32>
    %339 = arith.divf %337, %338 : vector<16x1xf32>
    %340 = vector.broadcast %339 : vector<16x1xf32> to vector<16x32xf32>
    %341 = arith.subf %333, %340 : vector<16x32xf32>
    %342 = arith.mulf %341, %341 : vector<16x32xf32>
    %cst_128 = arith.constant dense<0.000000e+00> : vector<16xf32>
    %343 = vector.multi_reduction <add>, %342, %cst_128 [1] : vector<16x32xf32> to vector<16xf32>
    %344 = vector.shape_cast %343 : vector<16xf32> to vector<16x1xf32>
    %cst_129 = arith.constant 3.200000e+01 : f32
    %345 = vector.broadcast %cst_129 : f32 to vector<16x1xf32>
    %346 = arith.divf %344, %345 : vector<16x1xf32>
    %cst_130 = arith.constant 9.99999974E-6 : f32
    %347 = vector.broadcast %cst_130 : f32 to vector<16x1xf32>
    %348 = arith.addf %346, %347 : vector<16x1xf32>
    %349 = math.rsqrt %348 : vector<16x1xf32>
    %350 = vector.broadcast %349 : vector<16x1xf32> to vector<16x32xf32>
    %351 = arith.mulf %341, %350 : vector<16x32xf32>
    %352 = vector.broadcast %334 : vector<1x32xf32> to vector<16x32xf32>
    %353 = arith.mulf %351, %352 : vector<16x32xf32>
    %354 = vector.broadcast %335 : vector<1x32xf32> to vector<16x32xf32>
    %355 = arith.addf %353, %354 : vector<16x32xf32>
    %c20 = arith.constant 20 : index
    %c0_131 = arith.constant 0 : index
    %356 = vector.load %arg4[%c20, %c0_131] : memref<24x128xf32, #tpu.memory_space<vmem>>, vector<1x32xf32>
    %c21 = arith.constant 21 : index
    %c0_132 = arith.constant 0 : index
    %357 = vector.load %arg4[%c21, %c0_132] : memref<24x128xf32, #tpu.memory_space<vmem>>, vector<1x32xf32>
    %cst_133 = arith.constant dense<0.000000e+00> : vector<16xf32>
    %358 = vector.multi_reduction <add>, %355, %cst_133 [1] : vector<16x32xf32> to vector<16xf32>
    %359 = vector.shape_cast %358 : vector<16xf32> to vector<16x1xf32>
    %cst_134 = arith.constant 3.200000e+01 : f32
    %360 = vector.broadcast %cst_134 : f32 to vector<16x1xf32>
    %361 = arith.divf %359, %360 : vector<16x1xf32>
    %362 = vector.broadcast %361 : vector<16x1xf32> to vector<16x32xf32>
    %363 = arith.subf %355, %362 : vector<16x32xf32>
    %364 = arith.mulf %363, %363 : vector<16x32xf32>
    %cst_135 = arith.constant dense<0.000000e+00> : vector<16xf32>
    %365 = vector.multi_reduction <add>, %364, %cst_135 [1] : vector<16x32xf32> to vector<16xf32>
    %366 = vector.shape_cast %365 : vector<16xf32> to vector<16x1xf32>
    %cst_136 = arith.constant 3.200000e+01 : f32
    %367 = vector.broadcast %cst_136 : f32 to vector<16x1xf32>
    %368 = arith.divf %366, %367 : vector<16x1xf32>
    %cst_137 = arith.constant 9.99999974E-6 : f32
    %369 = vector.broadcast %cst_137 : f32 to vector<16x1xf32>
    %370 = arith.addf %368, %369 : vector<16x1xf32>
    %371 = math.rsqrt %370 : vector<16x1xf32>
    %372 = vector.broadcast %371 : vector<16x1xf32> to vector<16x32xf32>
    %373 = arith.mulf %363, %372 : vector<16x32xf32>
    %374 = vector.broadcast %356 : vector<1x32xf32> to vector<16x32xf32>
    %375 = arith.mulf %373, %374 : vector<16x32xf32>
    %376 = vector.broadcast %357 : vector<1x32xf32> to vector<16x32xf32>
    %377 = arith.addf %375, %376 : vector<16x32xf32>
    %c408 = arith.constant 408 : index
    %c0_138 = arith.constant 0 : index
    %378 = vector.load %arg3[%c408, %c0_138] : memref<472x128xf32, #tpu.memory_space<vmem>>, vector<32x32xf32>
    %cst_139 = arith.constant dense<0.000000e+00> : vector<16x32xf32>
    %379 = tpu.matmul %377, %378, %cst_139 {dimension_numbers = #tpu.dot_dimension_numbers<[1], [0], [0], [1], [0, 0, 1, 1], [], []>} : vector<16x32xf32>, vector<32x32xf32>, vector<16x32xf32> -> vector<16x32xf32>
    %c22 = arith.constant 22 : index
    %c0_140 = arith.constant 0 : index
    %380 = vector.load %arg4[%c22, %c0_140] : memref<24x128xf32, #tpu.memory_space<vmem>>, vector<1x32xf32>
    %381 = vector.broadcast %380 : vector<1x32xf32> to vector<16x32xf32>
    %382 = arith.addf %379, %381 : vector<16x32xf32>
    %c3_141 = arith.constant 3 : index
    %383 = memref.load %arg5[%c3_141] : memref<4xf32, #tpu.memory_space<smem>>
    %cst_142 = arith.constant 0.000000e+00 : f32
    %384 = vector.broadcast %cst_142 : f32 to vector<16x32xf32>
    %385 = arith.cmpf ogt, %382, %384 : vector<16x32xf32>
    %386 = vector.broadcast %383 : f32 to vector<16x32xf32>
    %387 = arith.mulf %386, %382 : vector<16x32xf32>
    %388 = arith.select %385, %382, %387 : vector<16x32xi1>, vector<16x32xf32>
    %c440 = arith.constant 440 : index
    %c0_143 = arith.constant 0 : index
    %389 = vector.load %arg3[%c440, %c0_143] : memref<472x128xf32, #tpu.memory_space<vmem>>, vector<32x16xf32>
    %cst_144 = arith.constant dense<0.000000e+00> : vector<16x16xf32>
    %390 = tpu.matmul %388, %389, %cst_144 {dimension_numbers = #tpu.dot_dimension_numbers<[1], [0], [0], [1], [0, 0, 1, 1], [], []>} : vector<16x32xf32>, vector<32x16xf32>, vector<16x16xf32> -> vector<16x16xf32>
    %c23 = arith.constant 23 : index
    %c0_145 = arith.constant 0 : index
    %391 = vector.load %arg4[%c23, %c0_145] : memref<24x128xf32, #tpu.memory_space<vmem>>, vector<1x16xf32>
    %392 = vector.broadcast %391 : vector<1x16xf32> to vector<16x16xf32>
    %393 = arith.addf %390, %392 : vector<16x16xf32>
    %394 = vector.shape_cast %393 : vector<16x16xf32> to vector<2x8x16xf32>
    %c0_146 = arith.constant 0 : index
    %c0_147 = arith.constant 0 : index
    %c0_148 = arith.constant 0 : index
    %395 = vector.load %arg6[%c0_146, %c0_147, %c0_148] : memref<2x8x16xf32, #tpu.memory_space<vmem>>, vector<2x8x16xf32>
    tpu.vector_store %arg6[%c0_146, %c0_147, %c0_148], %394 {strides = array<i32>} : memref<2x8x16xf32, #tpu.memory_space<vmem>>, vector<2x8x16xf32>,
    return
  }
}

</mosaic_0001>

<bundles_post_ra>
// kernel: context_transformer.1
= control target key start
LH: loop header
LB: loop body
LE: loop exit
PB: predicated region body
PF: predicated region fallthrough
CT: control target
= control target key end

     0   :  { %11 = vsyncpa [#allocation3], 0  ;;  %s4561_s0 = inlined_call_operand.hbm [shape: f32[2,8,16], index: 0, kind: input, shape index: {}]   ;;  %s4562_s1 = inlined_call_operand.vmem [shape: f32[2,8,2], index: 1, kind: input, shape index: {}]   ;;  %s4563_s2 = inlined_call_operand.vmem [shape: f32[8,8], index: 2, kind: input, shape index: {}]   ;;  %s4564_s3 = inlined_call_operand.hbm [shape: f32[472,128], index: 3, kind: input, shape index: {}]   ;;  %s4565_s4 = inlined_call_operand.vmem [shape: f32[24,128], index: 4, kind: input, shape index: {}]   ;;  %s4566_s5 = inlined_call_operand.vmem [shape: f32[4], index: 5, kind: input, shape index: {}]   ;;  %s4567_s6 = inlined_call_operand.hbm [shape: f32[2,8,16], index: 6, kind: output, shape index: {}]  }
   0x1   :  { %12 = vsyncpa [#allocation7], 0 }
   0x2   :  { %13 = vsyncpa [#allocation5], 0 }
   0x3   :  { %14 = vsyncpa [#allocation4], 0  ;;  %s4133_s21 = smov [#allocation2]   ;;  %s4047_s25 = scalar_lea.hbm %s4561_s0, 256 }
   0x4   :  { %s20_s22 = sshll.u32 %s4133_s21, 4  ;;  %p4048_p0 = scmp.ne.s32.totalorder %s4561_s0, %s4047_s25  ;;  %s21_s22 = int_to_ptr.vmem [resolvable:$true] %s20_s22 }
   0x5   :  { %p4051_p1 = scmp.lt.u32.totalorder %s4047_s25, %s4561_s0 }
   0x7   :  { %p4053_p2 = pnand %p4051_p1, %p4048_p0 }
   0x9   :  { %4056 = shalt.err (!%p4053_p2)
}
   0xa   :  { %s4057_s30 = scalar_lea.vmem %s21_s22, 256  ;;  %p4062_p4 = scmp.lt.s32.totalorder %s21_s22, %s21_s22 }
   0xb   :  { %p4058_p3 = scmp.ne.s32.totalorder %s21_s22, %s4057_s30  ;;  %p4063_p5 = scmp.lt.s32.totalorder %s4057_s30, %s4057_s30 }
   0xd   :  { %p4064_p6 = por %p4063_p5, %p4062_p4 }
   0xf   :  { %p4065_p7 = pnand %p4064_p6, %p4058_p3 }
  0x11   :  { %4068 = shalt.err (!%p4065_p7)
}
  0x12   :  { %s4134_s7 = smov 128   ;;  %s4135_s8 = smov 8  }
  0x13   :  { %26 = dma.hbm_to_vmem [thread:$0]  %s4561_s0, 256, %s21_s22, [#allocation3], %s4134_s7, %s4134_s7, %s4135_s8  }
  0x14   :  { %s4136_s11 = smov [#allocation6]   ;;  %s51_s15 = sshll.u32 %s4566_s5, 4  ;;  %s52_s15 = int_to_ptr.vmem [resolvable:$true] %s51_s15 }
  0x15   :  { %s36_s12 = sshll.u32 %s4136_s11, 4  ;;  %s4069_s18 = scalar_lea.hbm %s4564_s3, 7552  ;;  %s37_s12 = int_to_ptr.vmem [resolvable:$true] %s36_s12 }
  0x16   :  { %p4070_p8 = scmp.ne.s32.totalorder %s4564_s3, %s4069_s18  ;;  %p4073_p9 = scmp.lt.u32.totalorder %s4069_s18, %s4564_s3 }
  0x18   :  { %p4075_p10 = pnand %p4073_p9, %p4070_p8 }
  0x1a   :  { %4078 = shalt.err (!%p4075_p10)
}
  0x1b   :  { %s4079_s0 = scalar_lea.vmem %s37_s12, 7552  ;;  %p4084_p12 = scmp.lt.s32.totalorder %s37_s12, %s37_s12 }
  0x1c   :  { %p4080_p11 = scmp.ne.s32.totalorder %s37_s12, %s4079_s0  ;;  %p4085_p13 = scmp.lt.s32.totalorder %s4079_s0, %s4079_s0 }
  0x1e   :  { %p4086_p0 = por %p4085_p13, %p4084_p12 }
  0x20   :  { %p4087_p1 = pnand %p4086_p0, %p4080_p11 }
  0x22   :  { %4090 = shalt.err (!%p4087_p1)
}
  0x23   :  { %42 = dma.hbm_to_vmem [thread:$0]  %s4564_s3, 7552, %s37_s12, [#allocation7], %s4134_s7, %s4134_s7, %s4135_s8  }
  0x24   :  { %s4091_s24 = scalar_lea.vmem %s52_s15, 16  ;;  %p4096_p3 = scmp.lt.s32.totalorder %s52_s15, %s52_s15 }
  0x25   :  { %p4092_p2 = scmp.ne.s32.totalorder %s52_s15, %s4091_s24  ;;  %p4097_p4 = scmp.lt.s32.totalorder %s4091_s24, %s4091_s24 }
  0x27   :  { %p4098_p5 = por %p4097_p4, %p4096_p3 }
  0x29   :  { %p4099_p6 = pnand %p4098_p5, %p4092_p2 }
  0x2b   :  { %4102 = shalt.err (!%p4099_p6)
}
  0x2c   :  { %s4137_s25 = smov [#allocation8]  }
  0x2d   :  { %54 = dma.vmem_to_smem %s52_s15, 16, %s4137_s25, [#allocation5]  }
  0x2e   :  { %4125 = dma.done.wait [#allocation3], 256  }
  0x2f   :  { %4126 = vsyncadd [#allocation3], 4294967040 }
  0x30   :  { %4127 = dma.done.wait [#allocation7], 7552  }
  0x31   :  { %4128 = vsyncadd [#allocation7], 4294959744 }
  0x32   :  { %4129 = dma.done.wait [#allocation5], 16  }
  0x33   :  { %4130 = vsyncadd [#allocation5], 4294967280 }
  0x34   :  { %64 = sfence }
  0x35   :  { %v70_v0 = vld [vmem:[#allocation6] sm:$0xff]  ;;  %v71_v1 = vld [vmem:[#allocation6 + $0x8] sm:$0xff]  ;;  %v266_v2 = vld [vmem:[#allocation6 + $0x30] sm:$0x3]  ;;  %vm279_vm0 = vcmask 1041408   ;;  %vm272_vm1 = vcmask 15360  }
  0x36   :  { %v3857_v3 = vpack.c.bf16 %v71_v1, %v70_v0  ;;  %3601 = vmatprep.subr.msk.mxu0 %vm279_vm0, %v266_v2  ;;  %v67_v4 = vld [vmem:[%s4562_s1] sm:$0xff]  ;;  %v68_v5 = vld [vmem:[%s4562_s1 + $0x8] sm:$0xff]  ;;  %vm77_vm2 = vcmask 130048   ;;  %v367_v9 = vld [vmem:[#allocation6 + $0x40] sm:$0xff]  ;;  %s3379_s1 = sld [smem:[#allocation8 + $0x2]]  ;;  %s159_s29 = sld [smem:[#allocation8]] }
  0x37   :  { %v65_v6 = vld [vmem:[#allocation2] sm:$0xff]  ;;  %3602 = vmatpush3.msk.msra.mxu0 %vm279_vm0, %v266_v2  ;;  %3603 = vmatprep.mubr.msk.f32.mxu0 %vm272_vm1, %v67_v4  ;;  %v66_v7 = vld [vmem:[#allocation2 + $0x8] sm:$0xff]  ;;  %v368_v14 = vld [vmem:[#allocation6 + $0x48] sm:$0xff]  ;;  %vm176_vm5 = vcmask 261120   ;;  %s3374_s12 = sld [smem:[#allocation8 + $0x1]]  ;;  %v4138_v63 = vmov 0.0  }
  0x38   :  { %3858 = vmatprep.subr.bf16.mxu1 %v3857_v3  ;;  %3604 = vmatmul.mubr.msk.f32.vlgmr.msra.gmra.mrb[0].mxu0 %vm272_vm1, %v68_v5  ;;  %v366_v8 = vld [vmem:[#allocation6 + $0x38] sm:$0xff]  ;;  %v167_v11 = vld [vmem:[#allocation6 + $0x10] sm:$0xff]  ;;  %v169_v17 = vld [vmem:[#allocation6 + $0x20] sm:$0xff]  ;;  %vm4139_vm10 = vmmov 0   ;;  %s4140_s19 = smov 112   ;;  %s4141_s20 = smov 96  }
  0x39   :  { %3860 = vmatpush3.bf16.msra.mxu1 %v3857_v3  ;;  %3587 = vmatprep.mubr.msk.f32.mxu1 %vm77_vm2, %v65_v6  ;;  %v3869_v10 = vpack.c.bf16 %v367_v9, %v366_v8  ;;  %v168_v12 = vld [vmem:[#allocation6 + $0x18] sm:$0xff]  ;;  %v369_v15 = vld [vmem:[#allocation6 + $0x50] sm:$0xff]  ;;  %v170_v18 = vld [vmem:[#allocation6 + $0x28] sm:$0xff]  ;;  %s4142_s21 = smov 80   ;;  %vm643_vm11 = vcmask 64512   ;;  %s4144_s5 = smov 64  }
  0x3a   :  { %v3861_v13 = vpack.c.bf16 %v168_v12, %v167_v11  ;;  %v3873_v16 = vpack.c.bf16 %v369_v15, %v368_v14  ;;  %v3865_v19 = vpack.c.bf16 %v170_v18, %v169_v17  ;;  %v3375_v20 = vld [vmem:[%s4565_s4 + $0x2] ss:$0 sm:$0xff]  ;;  %v3368_v26 = vld [vmem:[%s4565_s4] ss:$0 sm:$0xff]  ;;  %v458_v40 = vld [vmem:[#allocation6 + $0x58] sm:$0xff]  ;;  %vm1666_vm12 = vcmask 523264  }
  0x3b   :  { %3870 = vmatprep.subr.bf16.mxu0 %v3869_v10  ;;  %v459_v41 = vld [vmem:[#allocation6 + $0x60] sm:$0xff]  ;;  %v460_v43 = vld [vmem:[#allocation6 + $0x68] sm:$0xff]  ;;  %v461_v44 = vld [vmem:[#allocation6 + $0x70] sm:$0xff]  ;;  %s4146_s11 = smov [#allocation9]  }
  0x3c   :  { %3588 = vmatmul.mubr.msk.f32.vlgmr.msra.gmra.mrb[0].mxu1 %vm77_vm2, %v66_v7  ;;  %3872 = vmatpush3.bf16.msra.mxu0 %v3869_v10  ;;  %v361_v22 = vstv %s3379_s1  ;;  %v162_v30 = vstv %s159_s29  ;;  %v3877_v42 = vpack.c.bf16 %v459_v41, %v458_v40  ;;  %v3881_v45 = vpack.c.bf16 %v461_v44, %v460_v43  ;;  %v3371_v48 = vld [vmem:[%s4565_s4 + $0x1] ss:$0 sm:$0xff]  ;;  %v3380_v51 = vld [vmem:[%s4565_s4 + $0x3] ss:$0 sm:$0xff]  ;;  %s3448_s1 = sld [smem:[#allocation8 + $0x3]] }
  0x3d   :  { %3862 = vmatprep.subr.bf16.mxu1 %v3861_v13  ;;  %3874 = vmatprep.subr.bf16.mxu0 %v3873_v16  ;;  %v261_v50 = vstv %s3374_s12  ;;  %v3383_v0 = vld [vmem:[%s4565_s4 + $0x4] ss:$0 sm:$0xff]  ;;  %s3354_s12 = sshll.u32 %s4146_s11, 4  ;;  %s3355_s12 = int_to_ptr.vmem [resolvable:$true] %s3354_s12 }
  0x3e   :  { %3864 = vmatpush3.bf16.msra.mxu1 %v3861_v13  ;;  %v4273_v9 = vld [vmem:[%s4563_s2] sm:$0xff]  ;;  %s4143_s2 = smov 48   ;;  %s4103_s13 = scalar_lea.vmem %s3355_s12, 256 }
  0x3f   :  { %3866 = vmatprep.subr.bf16.mxu1 %v3865_v19  ;;  %p4104_p7 = scmp.ne.s32.totalorder %s3355_s12, %s4103_s13  ;;  %p4108_p8 = scmp.lt.s32.totalorder %s3355_s12, %s3355_s12 }
  0x40   :  { %3876 = vmatpush3.bf16.msra.mxu0 %v3873_v16  ;;  %p4109_p9 = scmp.lt.s32.totalorder %s4103_s13, %s4103_s13 }
  0x41   :  { %3628 = vmatprep.subr.mxu0 %v4138_v63 }
  0x42   :  { %3868 = vmatpush3.bf16.msra.mxu1 %v3865_v19  ;;  %p4110_p10 = por %p4109_p9, %p4108_p8 }
  0x43   :  { %3878 = vmatprep.subr.bf16.mxu1 %v3877_v42 }
  0x44   :  { %p4111_p11 = pnand %p4110_p10, %p4104_p7 }
 0x10b   :  { %v3605_v21 = vpop.f32.mrb[0].mxu0 }
 0x10c   :  { %v355_v23 = vadd.f32 %v3605_v21, %v3375_v20  ;;  %v349_v24 = vpop.f32.mrb[1].mxu0 }
 0x10d   :  { %v350_v25 = vadd.f32 %v3375_v20, %v349_v24 }
 0x10e   :  { %vm360_vm3 = vcmp.gt.f32.partialorder %v355_v23, 0.0  ;;  %v363_v27 = vmul.f32 %v361_v22, %v355_v23 }
 0x10f   :  { %vm359_vm4 = vcmp.gt.f32.partialorder %v350_v25, 0.0  ;;  %v362_v28 = vmul.f32 %v361_v22, %v350_v25  ;;  %v3589_v29 = vpop.f32.mrb[0].mxu1 }
 0x110   :  { %v365_v31 = vsel %vm360_vm3, %v355_v23, %v363_v27  ;;  %v156_v32 = vadd.f32 %v3589_v29, %v3368_v26  ;;  %v150_v33 = vpop.f32.mrb[1].mxu1  ;;  %v464_v29 = vld [vmem:[#allocation6 + $0x88] sm:$0xff] }
 0x111   :  { %v151_v34 = vadd.f32 %v3368_v26, %v150_v33  ;;  %v364_v35 = vsel %vm359_vm4, %v350_v25, %v362_v28 }
 0x112   :  { %v164_v36 = vmul.f32 %v162_v30, %v156_v32  ;;  %3614 = vmatprep.mubr.msk.f32.mxu0 %vm176_vm5, %v364_v35  ;;  %vm161_vm6 = vcmp.gt.f32.partialorder %v156_v32, 0.0 }
 0x113   :  { %vm160_vm7 = vcmp.gt.f32.partialorder %v151_v34, 0.0  ;;  %v163_v37 = vmul.f32 %v162_v30, %v151_v34  ;;  %3615 = vmatmul.mubr.msk.f32.vlgmr.msra.gmra.mrb[2].mxu0 %vm176_vm5, %v365_v31  ;;  %v465_v30 = vld [vmem:[#allocation6 + $0x90] sm:$0xff]  ;;  %v4145_v31 = vmov 0.0|0.0  }
 0x114   :  { %v166_v39 = vsel %vm161_vm6, %v156_v32, %v164_v36  ;;  %3630 = vmatprep.mubr.msk.f32.mxu0 %vm4139_vm10, %v4138_v63  ;;  %v3886_v32 = vpack.c.bf16 %v465_v30, %v464_v29 }
 0x115   :  { %v165_v38 = vsel %vm160_vm7, %v151_v34, %v163_v37 }
 0x116   :  { %3598 = vmatprep.mubr.msk.f32.mxu1 %vm176_vm5, %v165_v38  ;;  %v462_v38 = vld [vmem:[#allocation6 + $0x78] sm:$0xff] }
 0x117   :  { %3599 = vmatmul.mubr.msk.f32.vlgmr.msra.gmra.mrb[2].mxu1 %vm176_vm5, %v166_v39  ;;  %v463_v39 = vld [vmem:[#allocation6 + $0x80] sm:$0xff] }
 0x118   :  { %3880 = vmatpush3.bf16.msra.mxu1 %v3877_v42  ;;  %v4295_v42 = vpack.c.bf16 %v463_v39, %v462_v38  ;;  %v3403_v38 = vld [vmem:[%s4565_s4 + $0x6] ss:$0 sm:$0xff] }
 0x119   :  { %3882 = vmatprep.subr.bf16.mxu1 %v3881_v45 }
 0x11c   :  { %3884 = vmatpush3.bf16.msra.mxu1 %v3881_v45 }
 0x11d   :  { %3633 = vmatprep.subr.mxu1 %v4138_v63 }
 0x1e6   :  { %v3616_v46 = vpop.f32.mrb[2].mxu0 }
 0x1e7   :  { %v447_v47 = vpop.f32.mrb[3].mxu0  ;;  %v453_v56 = vadd.f32 %v3616_v46, %v3380_v51 }
 0x1e8   :  { %v448_v58 = vadd.f32 %v3380_v51, %v447_v47 }
 0x1ea   :  { %v3600_v49 = vpop.f32.mrb[2].mxu1 }
 0x1eb   :  { %v255_v52 = vadd.f32 %v3600_v49, %v3371_v48  ;;  %v249_v53 = vpop.f32.mrb[3].mxu1 }
 0x1ec   :  { %v250_v54 = vadd.f32 %v3371_v48, %v249_v53 }
 0x1ed   :  { %vm260_vm8 = vcmp.gt.f32.partialorder %v255_v52, 0.0  ;;  %v263_v55 = vmul.f32 %v261_v50, %v255_v52 }
 0x1ee   :  { %vm259_vm9 = vcmp.gt.f32.partialorder %v250_v54, 0.0  ;;  %v262_v57 = vmul.f32 %v261_v50, %v250_v54 }
 0x1ef   :  { %v265_v59 = vsel %vm260_vm8, %v255_v52, %v263_v55 }
 0x1f0   :  { %v4239_v60 = vadd.f32 %v453_v56, %v265_v59  ;;  %v264_v61 = vsel %vm259_vm9, %v250_v54, %v262_v57 }
 0x1f1   :  { %v4241_v62 = vadd.f32 %v448_v58, %v264_v61 }
 0x1f3   :  { %3625 = vmatprep.mubr.msk.f32.mxu1 %vm176_vm5, %v4241_v62 }
 0x1f4   :  { %3626 = vmatmul.mubr.msk.f32.vlgmr.msra.gmra.mrb[4].mxu1 %vm176_vm5, %v4239_v60 }
 0x1f5   :  { %3635 = vmatprep.mubr.msk.f32.mxu1 %vm4139_vm10, %v4138_v63 }
 0x2c7   :  { %v3627_v1 = vpop.f32.mrb[4].mxu1 }
 0x2c8   :  { %v4256_v2 = vadd.f32 %v3627_v1, %v3383_v0  ;;  %v555_v3 = vpop.f32.mrb[5].mxu1 }
 0x2c9   :  { %v556_v4 = vadd.f32 %v3383_v0, %v555_v3 }
 0x2cb   :  { %731 = vrot.lane.b32.xlu1 %v556_v4, %s4140_s19  ;;  %565 = vrot.lane.b32.xlu0 %v556_v4, %s4141_s20 }
 0x2cf   :  { %733 = vrot.lane.b32.xlu0 %v556_v4, %s4142_s21 }
 0x33d   :  { %v566_v5 = vpop.permute.xlu0 %565  ;;  %v732_v7 = vpop.permute.xlu1 %731 }
 0x33e   :  { %3629 = vmatpush3.xpose.msk.msra.mxu0 %vm77_vm2, %v566_v5 }
 0x33f   :  { %3638 = vmatprep.subr.mxu0 %v4138_v63 }
 0x341   :  { %3631 = vmatmul.mubr.msk.f32.vlgmr.msra.gmra.mrb[4].mxu0 %vm77_vm2, %v556_v4  ;;  %v734_v6 = vpop.permute.xlu0 %733 }
 0x342   :  { %3639 = vmatpush3.xpose.msk.msra.mxu0 %vm77_vm2, %v734_v6  ;;  %3640 = vmatprep.mubr.msk.f32.mxu0 %vm4139_vm10, %v4138_v63  ;;  %v4329_v6 = vld [vmem:[%s4565_s4 + $0x5] ss:$0 sm:$0xff] }
 0x343   :  { %3885 = vmatprep.subr.bf16.mxu0 %v4145_v31 }
 0x345   :  { %3641 = vmatmul.mubr.msk.f32.vlgmr.msra.gmra.mrb[6].mxu0 %vm77_vm2, %v732_v7 }
 0x346   :  { %3652 = vmatprep.mubr.msk.f32.mxu0 %vm4139_vm10, %v4138_v63  ;;  %3887 = vmatpush3.bf16.msra.mxu0 %v3886_v32 }
 0x347   :  { %3662 = vmatprep.subr.mxu0 %v4138_v63 }
 0x414   :  { %v637_v8 = vpop.f32.mrb[4].mxu0 }
 0x415   :  { %v641_v10 = vmul.f32 0.25, %v637_v8  ;;  %v3632_v11 = vpop.f32.mrb[5].mxu0 }
 0x417   :  { %v642_v12 = vadd.f32 %v641_v10, %v4273_v9 }
 0x418   :  { %v805_v13 = vpop.f32.mrb[6].mxu0 }
 0x419   :  { %v809_v14 = vmul.f32 0.25, %v805_v13  ;;  %v3642_v15 = vpop.f32.mrb[7].mxu0  ;;  %v644_v16 = vsel %vm643_vm11, %v642_v12, -inf }
 0x41a   :  { %645 = vmax.xlane.f32.xlu1 %v644_v16 }
 0x41b   :  { %v810_v17 = vadd.f32 %v809_v14, %v4273_v9 }
 0x41d   :  { %v811_v18 = vsel %vm643_vm11, %v810_v17, -inf }
 0x41e   :  { %812 = vmax.xlane.f32.xlu0 %v811_v18 }
 0x4a7   :  { %v646_v19 = vpop.xlane.xlu1 %645 }
 0x4a8   :  { %v647_v20 = vsub.f32 %v642_v12, %v646_v19 }
 0x4aa   :  { %v648_v21 = vmul.f32 1.442695, %v647_v20 }
 0x4ab   :  { %v813_v22 = vpop.xlane.xlu0 %812 }
 0x4ac   :  { %3995 = vpow2.f32 %v648_v21  ;;  %v814_v23 = vsub.f32 %v810_v17, %v813_v22 }
 0x4ae   :  { %v815_v24 = vmul.f32 1.442695, %v814_v23 }
 0x4b0   :  { %3997 = vpow2.f32 %v815_v24 }
 0x4b6   :  { %v3996_v25 = vpop.eup %3995 }
 0x4b7   :  { %v650_v26 = vsel %vm643_vm11, %v3996_v25, 0.0 }
 0x4b8   :  { %651 = vadd.xlane.f32.xlu0 %v650_v26 }
 0x4ba   :  { %v3998_v27 = vpop.eup %3997 }
 0x4bb   :  { %v817_v28 = vsel %vm643_vm11, %v3998_v27, 0.0 }
 0x4bc   :  { %818 = vadd.xlane.f32.xlu1 %v817_v28 }
 0x4cd   :  { %822 = vrot.lane.b32.xlu1 %v556_v4, %s4143_s2 }
 0x4ce   :  { %655 = vrot.lane.b32.xlu0 %v556_v4, %s4144_s5 }
 0x4d1   :  { %1045 = vrot.lane.b32.xlu1 %v4256_v2, %s4141_s20 }
 0x4d2   :  { %1212 = vrot.lane.b32.xlu0 %v4256_v2, %s4142_s21 }
 0x4d5   :  { %1210 = vrot.lane.b32.xlu1 %v4256_v2, %s4140_s19 }
 0x545   :  { %v652_v33 = vpop.xlane.xlu0 %651 }
 0x546   :  { %3999 = vrcp.f32 %v652_v33 }
 0x549   :  { %v819_v34 = vpop.xlane.xlu1 %818  ;;  %v656_v35 = vpop.permute.xlu0 %655 }
 0x54a   :  { %4001 = vrcp.f32 %v819_v34  ;;  %3634 = vmatpush3.msra.mxu1 %v656_v35 }
 0x54b   :  { %3643 = vmatprep.subr.mxu1 %v4138_v63 }
 0x54d   :  { %v823_v40 = vpop.permute.xlu1 %822  ;;  %v1213_v49 = vpop.permute.xlu0 %1212 }
 0x550   :  { %v4000_v36 = vpop.eup %3999 }
 0x551   :  { %v654_v37 = vmul.f32 %v4000_v36, %v3996_v25  ;;  %v1046_v47 = vpop.permute.xlu1 %1045 }
 0x553   :  { %3636 = vmatmul.mubr.msk.f32.vlgmr.msra.gmra.mrb[6].mxu1 %vm643_vm11, %v654_v37 }
 0x554   :  { %v4002_v41 = vpop.eup %4001  ;;  %3644 = vmatpush3.msra.mxu1 %v823_v40  ;;  %3645 = vmatprep.mubr.msk.f32.mxu1 %vm4139_vm10, %v4138_v63 }
 0x555   :  { %v821_v43 = vmul.f32 %v4002_v41, %v3998_v27  ;;  %3888 = vmatprep.subr.bf16.mxu1 %v4145_v31  ;;  %v1211_v50 = vpop.permute.xlu1 %1210 }
 0x557   :  { %3646 = vmatmul.mubr.msk.f32.vlgmr.msra.gmra.mrb[8].mxu1 %vm643_vm11, %v821_v43 }
 0x558   :  { %3890 = vmatpush3.bf16.msra.mxu1 %v4295_v42  ;;  %3659 = vmatprep.mubr.msk.f32.mxu1 %vm4139_vm10, %v4138_v63 }
 0x559   :  { %3667 = vmatprep.subr.mxu1 %v4138_v63 }
 0x626   :  { %v727_v44 = vpop.f32.mrb[6].mxu1 }
 0x627   :  { %v3637_v45 = vpop.f32.mrb[7].mxu1  ;;  %3660 = vmatmul.mubr.msk.f32.vlgmr.msra.gmra.mrb[10].mxu1 %vm77_vm2, %v727_v44 }
 0x628   :  { %3669 = vmatprep.mubr.msk.f32.mxu1 %vm4139_vm10, %v4138_v63 }
 0x62a   :  { %v894_v46 = vpop.f32.mrb[8].mxu1 }
 0x62b   :  { %v3647_v48 = vpop.f32.mrb[9].mxu1  ;;  %3653 = vmatmul.mubr.msk.f32.vlgmr.msra.gmra.mrb[8].mxu0 %vm77_vm2, %v894_v46 }
 0x62c   :  { %3663 = vmatpush3.xpose.msk.msra.mxu0 %vm77_vm2, %v1046_v47  ;;  %3664 = vmatprep.mubr.msk.f32.mxu0 %vm4139_vm10, %v4138_v63 }
 0x62d   :  { %3672 = vmatprep.subr.mxu0 %v4138_v63 }
 0x62f   :  { %3665 = vmatmul.mubr.msk.f32.vlgmr.msra.gmra.mrb[10].mxu0 %vm77_vm2, %v4256_v2 }
 0x630   :  { %3673 = vmatpush3.xpose.msk.msra.mxu0 %vm77_vm2, %v1213_v49  ;;  %3674 = vmatprep.mubr.msk.f32.mxu0 %vm4139_vm10, %v4138_v63 }
 0x631   :  { %3891 = vmatprep.subr.bf16.mxu0 %v4145_v31 }
 0x633   :  { %3675 = vmatmul.mubr.msk.f32.vlgmr.msra.gmra.mrb[12].mxu0 %vm77_vm2, %v1211_v50 }
 0x634   :  { %3893 = vmatpush3.bf16.msra.mxu0 %v3886_v32  ;;  %3686 = vmatprep.mubr.msk.f32.mxu0 %vm4139_vm10, %v4138_v63 }
 0x6fa   :  { %v1040_v51 = vpop.f32.mrb[10].mxu1 }
 0x6fb   :  { %v3661_v52 = vpop.f32.mrb[11].mxu1 }
 0x6fe   :  { %v967_v53 = vpop.f32.mrb[8].mxu0 }
 0x6ff   :  { %v1041_v54 = vadd.f32 %v1040_v51, %v967_v53  ;;  %v3654_v55 = vpop.f32.mrb[9].mxu0 }
 0x701   :  { %v1528_v7 = vadd.f32 %v4329_v6, %v1041_v54 }
 0x702   :  { %v1117_v56 = vpop.f32.mrb[10].mxu0 }
 0x703   :  { %v1121_v57 = vmul.f32 0.25, %v1117_v56  ;;  %v3666_v58 = vpop.f32.mrb[11].mxu0  ;;  %v1530_v8 = vadd.f32 %v1528_v7, %v4241_v62 }
 0x705   :  { %v1122_v59 = vadd.f32 %v1121_v57, %v4273_v9  ;;  %v1534_v10 = vsel %vm176_vm5, %v1530_v8, 0.0 }
 0x706   :  { %v1284_v61 = vpop.f32.mrb[12].mxu0 }
 0x707   :  { %v1288_v0 = vmul.f32 0.25, %v1284_v61  ;;  %v3676_v1 = vpop.f32.mrb[13].mxu0  ;;  %v1123_v3 = vsel %vm643_vm11, %v1122_v59, -inf  ;;  %v467_v61 = vld [vmem:[#allocation6 + $0xa0] sm:$0xff] }
 0x708   :  { %1124 = vmax.xlane.f32.xlu0 %v1123_v3  ;;  %v468_v1 = vld [vmem:[#allocation6 + $0xa8] sm:$0xff]  ;;  %v469_v3 = vld [vmem:[#allocation6 + $0xb0] sm:$0xff] }
 0x709   :  { %v1289_v4 = vadd.f32 %v1288_v0, %v4273_v9 }
 0x70b   :  { %v1290_v5 = vsel %vm643_vm11, %v1289_v4, -inf }
 0x70c   :  { %1291 = vmax.xlane.f32.xlu1 %v1290_v5  ;;  %v471_v5 = vld [vmem:[#allocation6 + $0xc0] sm:$0xff] }
 0x71d   :  { %1134 = vrot.lane.b32.xlu1 %v4256_v2, %s4144_s5 }
 0x741   :  { %1535 = vadd.xlane.f32.xlu1 %v1534_v10 }
 0x795   :  { %v1125_v11 = vpop.xlane.xlu0 %1124 }
 0x796   :  { %v1126_v12 = vsub.f32 %v1122_v59, %v1125_v11  ;;  %v466_v59 = vld [vmem:[#allocation6 + $0x98] sm:$0xff] }
 0x797   :  { %v3897_v0 = vpack.c.bf16 %v467_v61, %v466_v59  ;;  %v474_v11 = vld [vmem:[#allocation6 + $0xd8] sm:$0xff] }
 0x798   :  { %v1127_v13 = vmul.f32 1.442695, %v1126_v12  ;;  %v475_v12 = vld [vmem:[#allocation6 + $0xe0] sm:$0xff] }
 0x799   :  { %v1292_v14 = vpop.xlane.xlu1 %1291  ;;  %3898 = vmatprep.subr.bf16.mxu0 %v3897_v0 }
 0x79a   :  { %4003 = vpow2.f32 %v1127_v13  ;;  %v1293_v15 = vsub.f32 %v1289_v4, %v1292_v14  ;;  %v3901_v4 = vpack.c.bf16 %v469_v3, %v468_v1  ;;  %v3913_v13 = vpack.c.bf16 %v475_v12, %v474_v11  ;;  %v3411_v1 = vld [vmem:[%s4565_s4 + $0xa] ss:$0 sm:$0xff]  ;;  %v3413_v11 = vld [vmem:[%s4565_s4 + $0xc] ss:$0 sm:$0xff] }
 0x79c   :  { %v1294_v16 = vmul.f32 1.442695, %v1293_v15 }
 0x79d   :  { %v1135_v17 = vpop.permute.xlu1 %1134 }
 0x79e   :  { %4005 = vpow2.f32 %v1294_v16  ;;  %3668 = vmatpush3.msra.mxu1 %v1135_v17 }
 0x79f   :  { %3677 = vmatprep.subr.mxu1 %v4138_v63 }
 0x7a4   :  { %v4004_v18 = vpop.eup %4003 }
 0x7a5   :  { %v1129_v19 = vsel %vm643_vm11, %v4004_v18, 0.0 }
 0x7a6   :  { %1130 = vadd.xlane.f32.xlu0 %v1129_v19 }
 0x7a8   :  { %v4006_v62 = vpop.eup %4005 }
 0x7a9   :  { %v1296_v20 = vsel %vm643_vm11, %v4006_v62, 0.0 }
 0x7aa   :  { %1297 = vadd.xlane.f32.xlu0 %v1296_v20  ;;  %v476_v20 = vld [vmem:[#allocation6 + $0xe8] sm:$0xff] }
 0x7c0   :  { %1301 = vrot.lane.b32.xlu0 %v4256_v2, %s4143_s2 }
 0x7ce   :  { %v1536_v21 = vpop.xlane.xlu1 %1535 }
 0x7cf   :  { %v1541_v22 = vmul.f32 0.03125, %v1536_v21  ;;  %v477_v21 = vld [vmem:[#allocation6 + $0xf0] sm:$0xff] }
 0x7d1   :  { %v1543_v23 = vsub.f32 %v1530_v8, %v1541_v22  ;;  %v473_v8 = vld [vmem:[#allocation6 + $0xd0] sm:$0xff]  ;;  %v3917_v22 = vpack.c.bf16 %v477_v21, %v476_v20 }
 0x7d3   :  { %v1545_v24 = vmul.f32 %v1543_v23, %v1543_v23 }
 0x7d5   :  { %v1547_v25 = vsel %vm176_vm5, %v1545_v24, 0.0 }
 0x7d6   :  { %1548 = vadd.xlane.f32.xlu1 %v1547_v25 }
 0x833   :  { %v1131_v26 = vpop.xlane.xlu0 %1130 }
 0x834   :  { %4007 = vrcp.f32 %v1131_v26 }
 0x837   :  { %v1298_v27 = vpop.xlane.xlu0 %1297 }
 0x838   :  { %4009 = vrcp.f32 %v1298_v27 }
 0x83b   :  { %v1302_v30 = vpop.permute.xlu0 %1301 }
 0x83e   :  { %v4008_v28 = vpop.eup %4007 }
 0x83f   :  { %v1133_v29 = vmul.f32 %v4008_v28, %v4004_v18 }
 0x841   :  { %3670 = vmatmul.mubr.msk.f32.vlgmr.msra.gmra.mrb[12].mxu1 %vm643_vm11, %v1133_v29 }
 0x842   :  { %v4010_v32 = vpop.eup %4009  ;;  %3678 = vmatpush3.msra.mxu1 %v1302_v30  ;;  %3679 = vmatprep.mubr.msk.f32.mxu1 %vm4139_vm10, %v4138_v63  ;;  %v3408_v30 = vld [vmem:[%s4565_s4 + $0x9] ss:$0 sm:$0xff] }
 0x843   :  { %v1300_v2 = vmul.f32 %v4010_v32, %v4006_v62  ;;  %3894 = vmatprep.subr.bf16.mxu1 %v4145_v31 }
 0x845   :  { %3680 = vmatmul.mubr.msk.f32.vlgmr.msra.gmra.mrb[14].mxu1 %vm643_vm11, %v1300_v2 }
 0x846   :  { %3896 = vmatpush3.bf16.msra.mxu1 %v4295_v42  ;;  %3693 = vmatprep.mubr.msk.f32.mxu1 %vm4139_vm10, %v4138_v63  ;;  %v3404_v42 = vld [vmem:[%s4565_s4 + $0x7] ss:$0 sm:$0xff] }
 0x863   :  { %v1549_v33 = vpop.xlane.xlu1 %1548 }
 0x864   :  { %v1553_v34 = vmul.f32 0.03125, %v1549_v33 }
 0x866   :  { %v1555_v35 = vadd.f32 1e-05, %v1553_v34 }
 0x868   :  { %4011 = vrsqrt.f32 %v1555_v35 }
 0x872   :  { %v4012_v36 = vpop.eup %4011 }
 0x873   :  { %v1559_v37 = vmul.f32 %v4012_v36, %v1543_v23  ;;  %v3405_v23 = vld [vmem:[%s4565_s4 + $0x8] ss:$0 sm:$0xff] }
 0x875   :  { %v1565_v40 = vmul.f32 %v3403_v38, %v1559_v37 }
 0x877   :  { %v4355_v44 = vadd.f32 %v3404_v42, %v1565_v40 }
 0x914   :  { %v1206_v39 = vpop.f32.mrb[12].mxu1 }
 0x915   :  { %v3671_v41 = vpop.f32.mrb[13].mxu1  ;;  %3694 = vmatmul.mubr.msk.f32.vlgmr.msra.gmra.mrb[16].mxu1 %vm77_vm2, %v1206_v39 }
 0x918   :  { %v1373_v43 = vpop.f32.mrb[14].mxu1 }
 0x919   :  { %v3681_v45 = vpop.f32.mrb[15].mxu1  ;;  %3687 = vmatmul.mubr.msk.f32.vlgmr.msra.gmra.mrb[14].mxu0 %vm77_vm2, %v1373_v43 }
 0x91a   :  { %3704 = vmatprep.mubr.msk.f32.mxu0 %vm176_vm5, %v4355_v44  ;;  %3900 = vmatpush3.bf16.msra.mxu0 %v3897_v0 }
 0x91b   :  { %3902 = vmatprep.subr.bf16.mxu0 %v3901_v4 }
 0x91e   :  { %3904 = vmatpush3.bf16.msra.mxu0 %v3901_v4 }
 0x9e8   :  { %v1519_v46 = vpop.f32.mrb[16].mxu1 }
 0x9e9   :  { %v3695_v47 = vpop.f32.mrb[17].mxu1 }
 0x9ec   :  { %v1446_v48 = vpop.f32.mrb[14].mxu0 }
 0x9ed   :  { %v1520_v49 = vadd.f32 %v1519_v46, %v1446_v48  ;;  %v3688_v50 = vpop.f32.mrb[15].mxu0 }
 0x9ee   :  { %v1791_v50 = vld [vmem:[#allocation6 + $0x100] sm:$0xff] }
 0x9ef   :  { %v1529_v51 = vadd.f32 %v4329_v6, %v1520_v49  ;;  %v472_v6 = vld [vmem:[#allocation6 + $0xc8] sm:$0xff] }
 0x9f0   :  { %v3909_v10 = vpack.c.bf16 %v473_v8, %v472_v6 }
 0x9f1   :  { %v1531_v52 = vadd.f32 %v1529_v51, %v4239_v60  ;;  %v470_v60 = vld [vmem:[#allocation6 + $0xb8] sm:$0xff] }
 0x9f2   :  { %v3905_v7 = vpack.c.bf16 %v471_v5, %v470_v60  ;;  %v3412_v5 = vld [vmem:[%s4565_s4 + $0xb] ss:$0 sm:$0xff] }
 0x9f3   :  { %v1537_v53 = vsel %vm176_vm5, %v1531_v52, 0.0 }
 0x9f4   :  { %1538 = vadd.xlane.f32.xlu0 %v1537_v53  ;;  %3906 = vmatprep.subr.bf16.mxu1 %v3905_v7  ;;  %v1793_v53 = vld [vmem:[#allocation6 + $0x110] sm:$0xff] }
 0x9f5   :  { %3908 = vmatpush3.bf16.msra.mxu1 %v3905_v7 }
 0x9f6   :  { %3910 = vmatprep.subr.bf16.mxu1 %v3909_v10 }
 0x9f9   :  { %3912 = vmatpush3.bf16.msra.mxu1 %v3909_v10 }
 0x9fa   :  { %3914 = vmatprep.subr.bf16.mxu1 %v3913_v13 }
 0x9fd   :  { %3916 = vmatpush3.bf16.msra.mxu1 %v3913_v13 }
 0x9fe   :  { %3918 = vmatprep.subr.bf16.mxu1 %v3917_v22 }
 0xa01   :  { %3920 = vmatpush3.bf16.msra.mxu1 %v3917_v22 }
 0xa02   :  { %3742 = vmatprep.subr.mxu1 %v4138_v63 }
 0xa81   :  { %v1539_v54 = vpop.xlane.xlu0 %1538 }
 0xa82   :  { %v1542_v55 = vmul.f32 0.03125, %v1539_v54 }
 0xa84   :  { %v1544_v56 = vsub.f32 %v1531_v52, %v1542_v55  ;;  %v1792_v52 = vld [vmem:[#allocation6 + $0x108] sm:$0xff] }
 0xa85   :  { %v3925_v54 = vpack.c.bf16 %v1793_v53, %v1792_v52 }
 0xa86   :  { %v1546_v57 = vmul.f32 %v1544_v56, %v1544_v56 }
 0xa88   :  { %v1550_v58 = vsel %vm176_vm5, %v1546_v57, 0.0 }
 0xa89   :  { %1551 = vadd.xlane.f32.xlu0 %v1550_v58 }
 0xb16   :  { %v1552_v14 = vpop.xlane.xlu0 %1551 }
 0xb17   :  { %v1554_v15 = vmul.f32 0.03125, %v1552_v14 }
 0xb19   :  { %v1556_v16 = vadd.f32 1e-05, %v1554_v15 }
 0xb1b   :  { %4013 = vrsqrt.f32 %v1556_v16 }
 0xb25   :  { %v4014_v17 = vpop.eup %4013 }
 0xb26   :  { %v1560_v18 = vmul.f32 %v4014_v17, %v1544_v56 }
 0xb28   :  { %v1566_v19 = vmul.f32 %v3403_v38, %v1560_v18 }
 0xb2a   :  { %v1572_v62 = vadd.f32 %v3404_v42, %v1566_v19 }
 0xb2c   :  { %3705 = vmatmul.mubr.msk.f32.vlgmr.msra.gmra.mrb[16].mxu0 %vm176_vm5, %v1572_v62 }
 0xbff   :  { %v3706_v24 = vpop.f32.mrb[16].mxu0 }
 0xc00   :  { %v1656_v25 = vadd.f32 %v3706_v24, %v3405_v23  ;;  %v1650_v26 = vpop.f32.mrb[17].mxu0 }
 0xc01   :  { %v1651_v27 = vadd.f32 %v3405_v23, %v1650_v26 }
 0xc02   :  { %v1660_v29 = vmax.f32 %v1656_v25, 0.0 }
 0xc03   :  { %v1659_v28 = vmax.f32 %v1651_v27, 0.0 }
 0xc05   :  { %3723 = vmatprep.mubr.msk.f32.mxu1 %vm1666_vm12, %v1659_v28 }
 0xc06   :  { %3724 = vmatmul.mubr.msk.f32.vlgmr.msra.gmra.mrb[18].mxu1 %vm1666_vm12, %v1660_v29 }
 0xc07   :  { %3744 = vmatprep.mubr.msk.f32.mxu1 %vm4139_vm10, %v4138_v63 }
 0xcd9   :  { %v3725_v32 = vpop.f32.mrb[18].mxu1 }
 0xcda   :  { %v1745_v2 = vadd.f32 %v3725_v32, %v3408_v30  ;;  %v1739_v33 = vpop.f32.mrb[19].mxu1 }
 0xcdb   :  { %v1740_v34 = vadd.f32 %v3408_v30, %v1739_v33 }
 0xcdc   :  { %v1749_v35 = vadd.f32 %v1745_v2, %v1572_v62 }
 0xcdd   :  { %v1748_v36 = vadd.f32 %v1740_v34, %v4355_v44  ;;  %v1790_v44 = vld [vmem:[#allocation6 + $0xf8] sm:$0xff] }
 0xcde   :  { %v1755_v37 = vsel %vm176_vm5, %v1749_v35, 0.0  ;;  %v3921_v51 = vpack.c.bf16 %v1791_v50, %v1790_v44 }
 0xcdf   :  { %1756 = vadd.xlane.f32.xlu0 %v1755_v37  ;;  %v1752_v38 = vsel %vm176_vm5, %v1748_v36, 0.0 }
 0xce0   :  { %1753 = vadd.xlane.f32.xlu1 %v1752_v38  ;;  %3922 = vmatprep.subr.bf16.mxu0 %v3921_v51  ;;  %v1796_v38 = vld [vmem:[#allocation6 + $0x128] sm:$0xff] }
 0xce1   :  { %3924 = vmatpush3.bf16.msra.mxu0 %v3921_v51 }
 0xce2   :  { %3926 = vmatprep.subr.bf16.mxu0 %v3925_v54 }
 0xce5   :  { %3928 = vmatpush3.bf16.msra.mxu0 %v3925_v54 }
 0xce6   :  { %3737 = vmatprep.subr.mxu0 %v4138_v63 }
 0xd6c   :  { %v1757_v39 = vpop.xlane.xlu0 %1756 }
 0xd6d   :  { %v1759_v40 = vmul.f32 0.03125, %v1757_v39  ;;  %v1754_v41 = vpop.xlane.xlu1 %1753  ;;  %v1797_v39 = vld [vmem:[#allocation6 + $0x130] sm:$0xff] }
 0xd6e   :  { %v1758_v42 = vmul.f32 0.03125, %v1754_v41 }
 0xd6f   :  { %v1761_v43 = vsub.f32 %v1749_v35, %v1759_v40  ;;  %v3930_v40 = vpack.c.bf16 %v1797_v39, %v1796_v38 }
 0xd70   :  { %v1760_v45 = vsub.f32 %v1748_v36, %v1758_v42 }
 0xd71   :  { %v1763_v46 = vmul.f32 %v1761_v43, %v1761_v43 }
 0xd72   :  { %v1762_v47 = vmul.f32 %v1760_v45, %v1760_v45 }
 0xd73   :  { %v1767_v48 = vsel %vm176_vm5, %v1763_v46, 0.0 }
 0xd74   :  { %1768 = vadd.xlane.f32.xlu0 %v1767_v48  ;;  %v1764_v49 = vsel %vm176_vm5, %v1762_v47, 0.0  ;;  %v1794_v47 = vld [vmem:[#allocation6 + $0x118] sm:$0xff]  ;;  %v1795_v48 = vld [vmem:[#allocation6 + $0x120] sm:$0xff] }
 0xd75   :  { %1765 = vadd.xlane.f32.xlu1 %v1764_v49  ;;  %v4435_v50 = vpack.c.bf16 %v1795_v48, %v1794_v47 }
 0xe01   :  { %v1769_v55 = vpop.xlane.xlu0 %1768 }
 0xe02   :  { %v1771_v56 = vmul.f32 0.03125, %v1769_v55  ;;  %v1766_v57 = vpop.xlane.xlu1 %1765 }
 0xe03   :  { %v1770_v58 = vmul.f32 0.03125, %v1766_v57 }
 0xe04   :  { %v1773_v59 = vadd.f32 1e-05, %v1771_v56 }
 0xe05   :  { %v1772_v61 = vadd.f32 1e-05, %v1770_v58 }
 0xe06   :  { %4015 = vrsqrt.f32 %v1773_v59 }
 0xe07   :  { %4017 = vrsqrt.f32 %v1772_v61 }
 0xe10   :  { %v4016_v0 = vpop.eup %4015 }
 0xe11   :  { %v4018_v3 = vpop.eup %4017  ;;  %v1777_v4 = vmul.f32 %v4016_v0, %v1761_v43 }
 0xe12   :  { %v1776_v60 = vmul.f32 %v4018_v3, %v1760_v45 }
 0xe13   :  { %v1783_v6 = vmul.f32 %v3411_v1, %v1777_v4 }
 0xe14   :  { %v1782_v7 = vmul.f32 %v3411_v1, %v1776_v60 }
 0xe15   :  { %v4390_v10 = vadd.f32 %v3412_v5, %v1783_v6 }
 0xe16   :  { %v4388_v8 = vadd.f32 %v3412_v5, %v1782_v7 }
 0xe18   :  { %3734 = vmatprep.mubr.msk.f32.mxu0 %vm176_vm5, %v4388_v8 }
 0xe19   :  { %3735 = vmatmul.mubr.msk.f32.vlgmr.msra.gmra.mrb[18].mxu0 %vm176_vm5, %v4390_v10 }
 0xe1a   :  { %3739 = vmatprep.mubr.msk.f32.mxu0 %vm4139_vm10, %v4138_v63 }
 0xeec   :  { %v3736_v12 = vpop.f32.mrb[18].mxu0 }
 0xeed   :  { %v4401_v13 = vadd.f32 %v3736_v12, %v3413_v11  ;;  %v1887_v14 = vpop.f32.mrb[19].mxu0 }
 0xeee   :  { %v1888_v15 = vadd.f32 %v3413_v11, %v1887_v14 }
 0xef0   :  { %2064 = vrot.lane.b32.xlu0 %v1888_v15, %s4142_s21  ;;  %1897 = vrot.lane.b32.xlu1 %v1888_v15, %s4141_s20 }
 0xef4   :  { %2062 = vrot.lane.b32.xlu1 %v1888_v15, %s4140_s19 }
 0xf62   :  { %v1898_v16 = vpop.permute.xlu1 %1897  ;;  %v2065_v17 = vpop.permute.xlu0 %2064 }
 0xf63   :  { %3738 = vmatpush3.xpose.msk.msra.mxu0 %vm77_vm2, %v1898_v16 }
 0xf64   :  { %3747 = vmatprep.subr.mxu0 %v4138_v63 }
 0xf66   :  { %3740 = vmatmul.mubr.msk.f32.vlgmr.msra.gmra.mrb[20].mxu0 %vm77_vm2, %v1888_v15  ;;  %v2063_v18 = vpop.permute.xlu1 %2062 }
 0xf67   :  { %3748 = vmatpush3.xpose.msk.msra.mxu0 %vm77_vm2, %v2065_v17  ;;  %3749 = vmatprep.mubr.msk.f32.mxu0 %vm4139_vm10, %v4138_v63  ;;  %v4469_v17 = vld [vmem:[%s4565_s4 + $0xd] ss:$0 sm:$0xff] }
 0xf68   :  { %3929 = vmatprep.subr.bf16.mxu0 %v4145_v31 }
 0xf6a   :  { %3750 = vmatmul.mubr.msk.f32.vlgmr.msra.gmra.mrb[22].mxu0 %vm77_vm2, %v2063_v18 }
 0xf6b   :  { %3761 = vmatprep.mubr.msk.f32.mxu0 %vm4139_vm10, %v4138_v63  ;;  %3931 = vmatpush3.bf16.msra.mxu0 %v3930_v40 }
 0xf6c   :  { %3771 = vmatprep.subr.mxu0 %v4138_v63 }
0x1039   :  { %v1969_v19 = vpop.f32.mrb[20].mxu0 }
0x103a   :  { %v1973_v62 = vmul.f32 0.25, %v1969_v19  ;;  %v3741_v20 = vpop.f32.mrb[21].mxu0 }
0x103c   :  { %v1974_v21 = vadd.f32 %v1973_v62, %v4273_v9 }
0x103d   :  { %v2136_v22 = vpop.f32.mrb[22].mxu0 }
0x103e   :  { %v2140_v23 = vmul.f32 0.25, %v2136_v22  ;;  %v3751_v24 = vpop.f32.mrb[23].mxu0  ;;  %v1975_v25 = vsel %vm643_vm11, %v1974_v21, -inf }
0x103f   :  { %1976 = vmax.xlane.f32.xlu1 %v1975_v25 }
0x1040   :  { %v2141_v26 = vadd.f32 %v2140_v23, %v4273_v9 }
0x1042   :  { %v2142_v27 = vsel %vm643_vm11, %v2141_v26, -inf }
0x1043   :  { %2143 = vmax.xlane.f32.xlu0 %v2142_v27 }
0x10cc   :  { %v1977_v28 = vpop.xlane.xlu1 %1976 }
0x10cd   :  { %v1978_v29 = vsub.f32 %v1974_v21, %v1977_v28 }
0x10cf   :  { %v1979_v30 = vmul.f32 1.442695, %v1978_v29 }
0x10d0   :  { %v2144_v32 = vpop.xlane.xlu0 %2143 }
0x10d1   :  { %4019 = vpow2.f32 %v1979_v30  ;;  %v2145_v2 = vsub.f32 %v2141_v26, %v2144_v32 }
0x10d3   :  { %v2146_v33 = vmul.f32 1.442695, %v2145_v2 }
0x10d5   :  { %4021 = vpow2.f32 %v2146_v33 }
0x10db   :  { %v4020_v34 = vpop.eup %4019 }
0x10dc   :  { %v1981_v35 = vsel %vm643_vm11, %v4020_v34, 0.0 }
0x10dd   :  { %1982 = vadd.xlane.f32.xlu0 %v1981_v35 }
0x10df   :  { %v4022_v36 = vpop.eup %4021 }
0x10e0   :  { %v2148_v37 = vsel %vm643_vm11, %v4022_v36, 0.0 }
0x10e1   :  { %2149 = vadd.xlane.f32.xlu1 %v2148_v37 }
0x10f2   :  { %2153 = vrot.lane.b32.xlu1 %v1888_v15, %s4143_s2 }
0x10f3   :  { %1986 = vrot.lane.b32.xlu0 %v1888_v15, %s4144_s5 }
0x10f6   :  { %2376 = vrot.lane.b32.xlu1 %v4401_v13, %s4141_s20 }
0x10f7   :  { %2543 = vrot.lane.b32.xlu0 %v4401_v13, %s4142_s21 }
0x10fa   :  { %2541 = vrot.lane.b32.xlu1 %v4401_v13, %s4140_s19 }
0x116a   :  { %v1983_v41 = vpop.xlane.xlu0 %1982 }
0x116b   :  { %4023 = vrcp.f32 %v1983_v41 }
0x116e   :  { %v1987_v42 = vpop.permute.xlu0 %1986  ;;  %v2150_v43 = vpop.xlane.xlu1 %2149 }
0x116f   :  { %4025 = vrcp.f32 %v2150_v43  ;;  %3743 = vmatpush3.msra.mxu1 %v1987_v42 }
0x1170   :  { %3752 = vmatprep.subr.mxu1 %v4138_v63 }
0x1172   :  { %v2154_v49 = vpop.permute.xlu1 %2153  ;;  %v2544_v57 = vpop.permute.xlu0 %2543 }
0x1175   :  { %v4024_v45 = vpop.eup %4023 }
0x1176   :  { %v1985_v46 = vmul.f32 %v4024_v45, %v4020_v34  ;;  %v2377_v55 = vpop.permute.xlu1 %2376 }
0x1178   :  { %3745 = vmatmul.mubr.msk.f32.vlgmr.msra.gmra.mrb[20].mxu1 %vm643_vm11, %v1985_v46  ;;  %v3433_v46 = vld [vmem:[%s4565_s4 + $0xe] ss:$0 sm:$0xff] }
0x1179   :  { %v4026_v44 = vpop.eup %4025  ;;  %3753 = vmatpush3.msra.mxu1 %v2154_v49  ;;  %3754 = vmatprep.mubr.msk.f32.mxu1 %vm4139_vm10, %v4138_v63  ;;  %v3434_v49 = vld [vmem:[%s4565_s4 + $0xf] ss:$0 sm:$0xff] }
0x117a   :  { %v2152_v51 = vmul.f32 %v4026_v44, %v4022_v36  ;;  %3932 = vmatprep.subr.bf16.mxu1 %v4145_v31  ;;  %v2542_v58 = vpop.permute.xlu1 %2541 }
0x117c   :  { %3755 = vmatmul.mubr.msk.f32.vlgmr.msra.gmra.mrb[22].mxu1 %vm643_vm11, %v2152_v51 }
0x117d   :  { %3934 = vmatpush3.bf16.msra.mxu1 %v4435_v50  ;;  %3768 = vmatprep.mubr.msk.f32.mxu1 %vm4139_vm10, %v4138_v63 }
0x117e   :  { %3776 = vmatprep.subr.mxu1 %v4138_v63 }
0x124b   :  { %v2058_v52 = vpop.f32.mrb[20].mxu1 }
0x124c   :  { %v3746_v53 = vpop.f32.mrb[21].mxu1  ;;  %3769 = vmatmul.mubr.msk.f32.vlgmr.msra.gmra.mrb[24].mxu1 %vm77_vm2, %v2058_v52 }
0x124d   :  { %3778 = vmatprep.mubr.msk.f32.mxu1 %vm4139_vm10, %v4138_v63 }
0x124f   :  { %v2225_v54 = vpop.f32.mrb[22].mxu1 }
0x1250   :  { %v3756_v56 = vpop.f32.mrb[23].mxu1  ;;  %3762 = vmatmul.mubr.msk.f32.vlgmr.msra.gmra.mrb[24].mxu0 %vm77_vm2, %v2225_v54 }
0x1251   :  { %3772 = vmatpush3.xpose.msk.msra.mxu0 %vm77_vm2, %v2377_v55  ;;  %3773 = vmatprep.mubr.msk.f32.mxu0 %vm4139_vm10, %v4138_v63 }
0x1252   :  { %3781 = vmatprep.subr.mxu0 %v4138_v63 }
0x1254   :  { %3774 = vmatmul.mubr.msk.f32.vlgmr.msra.gmra.mrb[26].mxu0 %vm77_vm2, %v4401_v13 }
0x1255   :  { %3782 = vmatpush3.xpose.msk.msra.mxu0 %vm77_vm2, %v2544_v57  ;;  %3783 = vmatprep.mubr.msk.f32.mxu0 %vm4139_vm10, %v4138_v63 }
0x1256   :  { %3935 = vmatprep.subr.bf16.mxu0 %v4145_v31 }
0x1258   :  { %3784 = vmatmul.mubr.msk.f32.vlgmr.msra.gmra.mrb[28].mxu0 %vm77_vm2, %v2542_v58 }
0x1259   :  { %3937 = vmatpush3.bf16.msra.mxu0 %v3930_v40  ;;  %3795 = vmatprep.mubr.msk.f32.mxu0 %vm4139_vm10, %v4138_v63 }
0x131f   :  { %v2371_v59 = vpop.f32.mrb[24].mxu1 }
0x1320   :  { %v3770_v61 = vpop.f32.mrb[25].mxu1 }
0x1323   :  { %v2298_v0 = vpop.f32.mrb[24].mxu0 }
0x1324   :  { %v2372_v1 = vadd.f32 %v2371_v59, %v2298_v0  ;;  %v3763_v3 = vpop.f32.mrb[25].mxu0 }
0x1326   :  { %v2859_v18 = vadd.f32 %v4469_v17, %v2372_v1 }
0x1327   :  { %v2448_v4 = vpop.f32.mrb[26].mxu0 }
0x1328   :  { %v2452_v60 = vmul.f32 0.25, %v2448_v4  ;;  %v3775_v5 = vpop.f32.mrb[27].mxu0  ;;  %v2861_v19 = vadd.f32 %v2859_v18, %v4388_v8  ;;  %v1798_v4 = vld [vmem:[#allocation6 + $0x138] sm:$0xff] }
0x1329   :  { %v1806_v18 = vld [vmem:[#allocation6 + $0x178] sm:$0xff] }
0x132a   :  { %v2453_v6 = vadd.f32 %v2452_v60, %v4273_v9  ;;  %v2865_v62 = vsel %vm176_vm5, %v2861_v19, 0.0  ;;  %v1799_v60 = vld [vmem:[#allocation6 + $0x140] sm:$0xff] }
0x132b   :  { %v2615_v7 = vpop.f32.mrb[28].mxu0  ;;  %v3941_v5 = vpack.c.bf16 %v1799_v60, %v1798_v4 }
0x132c   :  { %v2619_v11 = vmul.f32 0.25, %v2615_v7  ;;  %v3785_v12 = vpop.f32.mrb[29].mxu0  ;;  %v2454_v14 = vsel %vm643_vm11, %v2453_v6, -inf  ;;  %v1801_v7 = vld [vmem:[#allocation6 + $0x150] sm:$0xff] }
0x132d   :  { %2455 = vmax.xlane.f32.xlu0 %v2454_v14  ;;  %3942 = vmatprep.subr.bf16.mxu0 %v3941_v5  ;;  %v1803_v12 = vld [vmem:[#allocation6 + $0x160] sm:$0xff]  ;;  %v1804_v14 = vld [vmem:[#allocation6 + $0x168] sm:$0xff] }
0x132e   :  { %v2620_v15 = vadd.f32 %v2619_v11, %v4273_v9 }
0x1330   :  { %v2621_v16 = vsel %vm643_vm11, %v2620_v15, -inf }
0x1331   :  { %2622 = vmax.xlane.f32.xlu1 %v2621_v16  ;;  %v1805_v16 = vld [vmem:[#allocation6 + $0x170] sm:$0xff] }
0x1342   :  { %2465 = vrot.lane.b32.xlu1 %v4401_v13, %s4144_s5 }
0x1366   :  { %2866 = vadd.xlane.f32.xlu1 %v2865_v62 }
0x13ba   :  { %v2456_v20 = vpop.xlane.xlu0 %2455 }
0x13bb   :  { %v2457_v9 = vsub.f32 %v2453_v6, %v2456_v20  ;;  %v1800_v6 = vld [vmem:[#allocation6 + $0x148] sm:$0xff] }
0x13bc   :  { %v3945_v11 = vpack.c.bf16 %v1801_v7, %v1800_v6 }
0x13bd   :  { %v2458_v21 = vmul.f32 1.442695, %v2457_v9 }
0x13be   :  { %v2623_v22 = vpop.xlane.xlu1 %2622 }
0x13bf   :  { %4027 = vpow2.f32 %v2458_v21  ;;  %v2624_v23 = vsub.f32 %v2620_v15, %v2623_v22 }
0x13c1   :  { %v2625_v24 = vmul.f32 1.442695, %v2624_v23 }
0x13c2   :  { %v2466_v25 = vpop.permute.xlu1 %2465 }
0x13c3   :  { %4029 = vpow2.f32 %v2625_v24  ;;  %3777 = vmatpush3.msra.mxu1 %v2466_v25 }
0x13c4   :  { %3786 = vmatprep.subr.mxu1 %v4138_v63 }
0x13c9   :  { %v4028_v26 = vpop.eup %4027 }
0x13ca   :  { %v2460_v27 = vsel %vm643_vm11, %v4028_v26, 0.0 }
0x13cb   :  { %2461 = vadd.xlane.f32.xlu0 %v2460_v27  ;;  %v1809_v27 = vld [vmem:[#allocation6 + $0x190] sm:$0xff] }
0x13cd   :  { %v4030_v8 = vpop.eup %4029 }
0x13ce   :  { %v2627_v28 = vsel %vm643_vm11, %v4030_v8, 0.0 }
0x13cf   :  { %2628 = vadd.xlane.f32.xlu0 %v2627_v28  ;;  %v3435_v28 = vld [vmem:[%s4565_s4 + $0x10] ss:$0 sm:$0xff] }
0x13e5   :  { %2632 = vrot.lane.b32.xlu0 %v4401_v13, %s4143_s2 }
0x13f3   :  { %v2867_v29 = vpop.xlane.xlu1 %2866 }
0x13f4   :  { %v2871_v30 = vmul.f32 0.03125, %v2867_v29 }
0x13f6   :  { %v2873_v32 = vsub.f32 %v2861_v19, %v2871_v30  ;;  %v1807_v19 = vld [vmem:[#allocation6 + $0x180] sm:$0xff] }
0x13f7   :  { %v3957_v62 = vpack.c.bf16 %v1807_v19, %v1806_v18 }
0x13f8   :  { %v2875_v2 = vmul.f32 %v2873_v32, %v2873_v32 }
0x13fa   :  { %v2877_v33 = vsel %vm176_vm5, %v2875_v2, 0.0 }
0x13fb   :  { %2878 = vadd.xlane.f32.xlu1 %v2877_v33 }
0x1458   :  { %v2462_v34 = vpop.xlane.xlu0 %2461 }
0x1459   :  { %4031 = vrcp.f32 %v2462_v34 }
0x145c   :  { %v2629_v35 = vpop.xlane.xlu0 %2628 }
0x145d   :  { %4033 = vrcp.f32 %v2629_v35  ;;  %v3438_v35 = vld [vmem:[%s4565_s4 + $0x11] ss:$0 sm:$0xff] }
0x1460   :  { %v2633_v38 = vpop.permute.xlu0 %2632 }
0x1463   :  { %v4032_v36 = vpop.eup %4031 }
0x1464   :  { %v2464_v37 = vmul.f32 %v4032_v36, %v4028_v26  ;;  %v1808_v26 = vld [vmem:[#allocation6 + $0x188] sm:$0xff] }
0x1466   :  { %3779 = vmatmul.mubr.msk.f32.vlgmr.msra.gmra.mrb[26].mxu1 %vm643_vm11, %v2464_v37 }
0x1467   :  { %v4034_v39 = vpop.eup %4033  ;;  %3787 = vmatpush3.msra.mxu1 %v2633_v38  ;;  %3788 = vmatprep.mubr.msk.f32.mxu1 %vm4139_vm10, %v4138_v63 }
0x1468   :  { %v2631_v13 = vmul.f32 %v4034_v39, %v4030_v8  ;;  %3938 = vmatprep.subr.bf16.mxu1 %v4145_v31  ;;  %v3961_v8 = vpack.c.bf16 %v1809_v27, %v1808_v26 }
0x146a   :  { %3789 = vmatmul.mubr.msk.f32.vlgmr.msra.gmra.mrb[28].mxu1 %vm643_vm11, %v2631_v13 }
0x146b   :  { %3940 = vmatpush3.bf16.msra.mxu1 %v4435_v50  ;;  %3802 = vmatprep.mubr.msk.f32.mxu1 %vm4139_vm10, %v4138_v63 }
0x1488   :  { %v2879_v40 = vpop.xlane.xlu1 %2878 }
0x1489   :  { %v2883_v41 = vmul.f32 0.03125, %v2879_v40 }
0x148b   :  { %v2885_v42 = vadd.f32 1e-05, %v2883_v41 }
0x148d   :  { %4035 = vrsqrt.f32 %v2885_v42 }
0x1497   :  { %v4036_v43 = vpop.eup %4035 }
0x1498   :  { %v2889_v45 = vmul.f32 %v4036_v43, %v2873_v32 }
0x149a   :  { %v2895_v48 = vmul.f32 %v3433_v46, %v2889_v45 }
0x149c   :  { %v4495_v44 = vadd.f32 %v3434_v49, %v2895_v48 }
0x1539   :  { %v2537_v47 = vpop.f32.mrb[26].mxu1 }
0x153a   :  { %v3780_v31 = vpop.f32.mrb[27].mxu1  ;;  %3803 = vmatmul.mubr.msk.f32.vlgmr.msra.gmra.mrb[30].mxu1 %vm77_vm2, %v2537_v47 }
0x153d   :  { %v2704_v63 = vpop.f32.mrb[28].mxu1 }
0x153e   :  { %v3790_v50 = vpop.f32.mrb[29].mxu1  ;;  %3796 = vmatmul.mubr.msk.f32.vlgmr.msra.gmra.mrb[30].mxu0 %vm77_vm2, %v2704_v63 }
0x153f   :  { %3813 = vmatprep.mubr.msk.f32.mxu0 %vm176_vm5, %v4495_v44  ;;  %3944 = vmatpush3.bf16.msra.mxu0 %v3941_v5 }
0x1540   :  { %3946 = vmatprep.subr.bf16.mxu0 %v3945_v11 }
0x1543   :  { %3948 = vmatpush3.bf16.msra.mxu0 %v3945_v11 }
0x160d   :  { %v2850_v51 = vpop.f32.mrb[30].mxu1 }
0x160e   :  { %v3804_v52 = vpop.f32.mrb[31].mxu1 }
0x1611   :  { %v2777_v53 = vpop.f32.mrb[30].mxu0 }
0x1612   :  { %v2851_v54 = vadd.f32 %v2850_v51, %v2777_v53  ;;  %v3797_v55 = vpop.f32.mrb[31].mxu0 }
0x1614   :  { %v2860_v56 = vadd.f32 %v4469_v17, %v2851_v54  ;;  %v3953_v17 = vpack.c.bf16 %v1805_v16, %v1804_v14 }
0x1616   :  { %v2862_v57 = vadd.f32 %v2860_v56, %v4390_v10  ;;  %v1802_v10 = vld [vmem:[#allocation6 + $0x158] sm:$0xff] }
0x1617   :  { %v3949_v15 = vpack.c.bf16 %v1803_v12, %v1802_v10 }
0x1618   :  { %v2868_v58 = vsel %vm176_vm5, %v2862_v57, 0.0 }
0x1619   :  { %2869 = vadd.xlane.f32.xlu0 %v2868_v58  ;;  %3950 = vmatprep.subr.bf16.mxu1 %v3949_v15  ;;  %v3441_v58 = vld [vmem:[%s4565_s4 + $0x12] ss:$0 sm:$0xff] }
0x161a   :  { %3952 = vmatpush3.bf16.msra.mxu1 %v3949_v15 }
0x161b   :  { %3954 = vmatprep.subr.bf16.mxu1 %v3953_v17 }
0x161e   :  { %3956 = vmatpush3.bf16.msra.mxu1 %v3953_v17 }
0x161f   :  { %3958 = vmatprep.subr.bf16.mxu1 %v3957_v62 }
0x1622   :  { %3960 = vmatpush3.bf16.msra.mxu1 %v3957_v62 }
0x1623   :  { %3962 = vmatprep.subr.bf16.mxu1 %v3961_v8 }
0x1626   :  { %3964 = vmatpush3.bf16.msra.mxu1 %v3961_v8 }
0x16a6   :  { %v2870_v59 = vpop.xlane.xlu0 %2869 }
0x16a7   :  { %v2872_v61 = vmul.f32 0.03125, %v2870_v59 }
0x16a9   :  { %v2874_v0 = vsub.f32 %v2862_v57, %v2872_v61 }
0x16ab   :  { %v2876_v1 = vmul.f32 %v2874_v0, %v2874_v0 }
0x16ad   :  { %v2880_v3 = vsel %vm176_vm5, %v2876_v1, 0.0 }
0x16ae   :  { %2881 = vadd.xlane.f32.xlu0 %v2880_v3 }
0x173b   :  { %v2882_v20 = vpop.xlane.xlu0 %2881 }
0x173c   :  { %v2884_v9 = vmul.f32 0.03125, %v2882_v20  ;;  %v3159_v20 = vld [vmem:[#allocation6 + $0x198] sm:$0xff] }
0x173e   :  { %v2886_v21 = vadd.f32 1e-05, %v2884_v9  ;;  %v3160_v9 = vld [vmem:[#allocation6 + $0x1a0] sm:$0xff] }
0x1740   :  { %4037 = vrsqrt.f32 %v2886_v21  ;;  %v3965_v21 = vpack.c.bf16 %v3160_v9, %v3159_v20 }
0x1742   :  { %3966 = vmatprep.subr.bf16.mxu0 %v3965_v21 }
0x174a   :  { %v4038_v22 = vpop.eup %4037 }
0x174b   :  { %v2890_v23 = vmul.f32 %v4038_v22, %v2874_v0  ;;  %v3442_v0 = vld [vmem:[%s4565_s4 + $0x13] ss:$0 sm:$0xff]  ;;  %v3161_v22 = vld [vmem:[#allocation6 + $0x1a8] sm:$0xff] }
0x174d   :  { %v2896_v24 = vmul.f32 %v3433_v46, %v2890_v23  ;;  %v3162_v23 = vld [vmem:[#allocation6 + $0x1b0] sm:$0xff] }
0x174f   :  { %v2902_v25 = vadd.f32 %v3434_v49, %v2896_v24  ;;  %v3969_v24 = vpack.c.bf16 %v3162_v23, %v3161_v22 }
0x1751   :  { %3814 = vmatmul.mubr.msk.f32.vlgmr.msra.gmra.mrb[32].mxu0 %vm176_vm5, %v2902_v25 }
0x1752   :  { %3968 = vmatpush3.bf16.msra.mxu0 %v3965_v21 }
0x1753   :  { %3970 = vmatprep.subr.bf16.mxu0 %v3969_v24 }
0x1756   :  { %3972 = vmatpush3.bf16.msra.mxu0 %v3969_v24 }
0x1824   :  { %v3815_v29 = vpop.f32.mrb[32].mxu0 }
0x1825   :  { %v2986_v30 = vadd.f32 %v3815_v29, %v3435_v28  ;;  %v2980_v32 = vpop.f32.mrb[33].mxu0 }
0x1826   :  { %v2981_v2 = vadd.f32 %v3435_v28, %v2980_v32  ;;  %v3443_v32 = vld [vmem:[%s4565_s4 + $0x14] ss:$0 sm:$0xff] }
0x1827   :  { %v2990_v34 = vmax.f32 %v2986_v30, 0.0 }
0x1828   :  { %v2989_v33 = vmax.f32 %v2981_v2, 0.0 }
0x182a   :  { %3832 = vmatprep.mubr.msk.f32.mxu1 %vm1666_vm12, %v2989_v33 }
0x182b   :  { %3833 = vmatmul.mubr.msk.f32.vlgmr.msra.gmra.mrb[32].mxu1 %vm1666_vm12, %v2990_v34 }
0x18fe   :  { %v3834_v36 = vpop.f32.mrb[32].mxu1 }
0x18ff   :  { %v3074_v37 = vadd.f32 %v3834_v36, %v3438_v35  ;;  %v3068_v38 = vpop.f32.mrb[33].mxu1 }
0x1900   :  { %v3069_v39 = vadd.f32 %v3438_v35, %v3068_v38  ;;  %v3444_v35 = vld [vmem:[%s4565_s4 + $0x15] ss:$0 sm:$0xff] }
0x1901   :  { %v3078_v13 = vadd.f32 %v3074_v37, %v2902_v25 }
0x1902   :  { %v3077_v40 = vadd.f32 %v3069_v39, %v4495_v44 }
0x1903   :  { %v3084_v41 = vsel %vm176_vm5, %v3078_v13, 0.0 }
0x1904   :  { %3085 = vadd.xlane.f32.xlu0 %v3084_v41  ;;  %v3081_v42 = vsel %vm176_vm5, %v3077_v40, 0.0 }
0x1905   :  { %3082 = vadd.xlane.f32.xlu1 %v3081_v42  ;;  %v3259_v42 = vld [vmem:[#allocation6 + $0x1c8] sm:$0xff] }
0x1991   :  { %v3086_v43 = vpop.xlane.xlu0 %3085 }
0x1992   :  { %v3088_v45 = vmul.f32 0.03125, %v3086_v43  ;;  %v3083_v46 = vpop.xlane.xlu1 %3082  ;;  %v3260_v43 = vld [vmem:[#allocation6 + $0x1d0] sm:$0xff] }
0x1993   :  { %v3087_v47 = vmul.f32 0.03125, %v3083_v46  ;;  %v3445_v46 = vld [vmem:[%s4565_s4 + $0x16] ss:$0 sm:$0xff] }
0x1994   :  { %v3090_v48 = vsub.f32 %v3078_v13, %v3088_v45  ;;  %v3257_v13 = vld [vmem:[#allocation6 + $0x1b8] sm:$0xff]  ;;  %v3977_v45 = vpack.c.bf16 %v3260_v43, %v3259_v42 }
0x1995   :  { %v3089_v31 = vsub.f32 %v3077_v40, %v3087_v47  ;;  %v3258_v40 = vld [vmem:[#allocation6 + $0x1c0] sm:$0xff] }
0x1996   :  { %v3092_v49 = vmul.f32 %v3090_v48, %v3090_v48  ;;  %v3973_v41 = vpack.c.bf16 %v3258_v40, %v3257_v13 }
0x1997   :  { %v3091_v63 = vmul.f32 %v3089_v31, %v3089_v31 }
0x1998   :  { %v3096_v50 = vsel %vm176_vm5, %v3092_v49, 0.0  ;;  %3974 = vmatprep.subr.bf16.mxu0 %v3973_v41 }
0x1999   :  { %3097 = vadd.xlane.f32.xlu0 %v3096_v50  ;;  %v3093_v51 = vsel %vm176_vm5, %v3091_v63, 0.0 }
0x199a   :  { %3094 = vadd.xlane.f32.xlu1 %v3093_v51 }
0x1a26   :  { %v3098_v44 = vpop.xlane.xlu0 %3097 }
0x1a27   :  { %v3100_v52 = vmul.f32 0.03125, %v3098_v44  ;;  %v3095_v53 = vpop.xlane.xlu1 %3094 }
0x1a28   :  { %v3099_v54 = vmul.f32 0.03125, %v3095_v53  ;;  %v3449_v53 = vld [vmem:[%s4565_s4 + $0x17] ss:$0 sm:$0xff] }
0x1a29   :  { %v3102_v55 = vadd.f32 1e-05, %v3100_v52 }
0x1a2a   :  { %v3101_v56 = vadd.f32 1e-05, %v3099_v54 }
0x1a2b   :  { %4039 = vrsqrt.f32 %v3102_v55 }
0x1a2c   :  { %4041 = vrsqrt.f32 %v3101_v56 }
0x1a35   :  { %v4040_v57 = vpop.eup %4039 }
0x1a36   :  { %v4042_v59 = vpop.eup %4041  ;;  %v3106_v61 = vmul.f32 %v4040_v57, %v3090_v48  ;;  %v3252_v48 = vstv %s3448_s1 }
0x1a37   :  { %v3105_v1 = vmul.f32 %v4042_v59, %v3089_v31 }
0x1a38   :  { %v3112_v3 = vmul.f32 %v3441_v58, %v3106_v61 }
0x1a39   :  { %v3111_v4 = vmul.f32 %v3441_v58, %v3105_v1 }
0x1a3a   :  { %v3118_v60 = vadd.f32 %v3442_v0, %v3112_v3 }
0x1a3b   :  { %v3117_v5 = vadd.f32 %v3442_v0, %v3111_v4 }
0x1a3c   :  { %v3124_v6 = vsel %vm176_vm5, %v3118_v60, 0.0 }
0x1a3d   :  { %3125 = vadd.xlane.f32.xlu0 %v3124_v6  ;;  %v3121_v7 = vsel %vm176_vm5, %v3117_v5, 0.0 }
0x1a3e   :  { %3122 = vadd.xlane.f32.xlu1 %v3121_v7 }
0x1aca   :  { %v3126_v11 = vpop.xlane.xlu0 %3125 }
0x1acb   :  { %v3128_v10 = vmul.f32 0.03125, %v3126_v11  ;;  %v3123_v12 = vpop.xlane.xlu1 %3122 }
0x1acc   :  { %v3127_v14 = vmul.f32 0.03125, %v3123_v12 }
0x1acd   :  { %v3130_v15 = vsub.f32 %v3118_v60, %v3128_v10 }
0x1ace   :  { %v3129_v16 = vsub.f32 %v3117_v5, %v3127_v14 }
0x1acf   :  { %v3132_v17 = vmul.f32 %v3130_v15, %v3130_v15 }
0x1ad0   :  { %v3131_v18 = vmul.f32 %v3129_v16, %v3129_v16 }
0x1ad1   :  { %v3136_v19 = vsel %vm176_vm5, %v3132_v17, 0.0 }
0x1ad2   :  { %3137 = vadd.xlane.f32.xlu0 %v3136_v19  ;;  %v3133_v62 = vsel %vm176_vm5, %v3131_v18, 0.0 }
0x1ad3   :  { %3134 = vadd.xlane.f32.xlu1 %v3133_v62 }
0x1b5f   :  { %v3138_v25 = vpop.xlane.xlu0 %3137 }
0x1b60   :  { %v3140_v26 = vmul.f32 0.03125, %v3138_v25  ;;  %v3135_v27 = vpop.xlane.xlu1 %3134 }
0x1b61   :  { %v3139_v8 = vmul.f32 0.03125, %v3135_v27 }
0x1b62   :  { %v3142_v28 = vadd.f32 1e-05, %v3140_v26 }
0x1b63   :  { %v3141_v29 = vadd.f32 1e-05, %v3139_v8 }
0x1b64   :  { %4043 = vrsqrt.f32 %v3142_v28 }
0x1b65   :  { %4045 = vrsqrt.f32 %v3141_v29 }
0x1b6e   :  { %v4044_v30 = vpop.eup %4043 }
0x1b6f   :  { %v4046_v2 = vpop.eup %4045  ;;  %v3146_v33 = vmul.f32 %v4044_v30, %v3130_v15 }
0x1b70   :  { %v3145_v34 = vmul.f32 %v4046_v2, %v3129_v16 }
0x1b71   :  { %v3152_v36 = vmul.f32 %v3443_v32, %v3146_v33 }
0x1b72   :  { %v3151_v37 = vmul.f32 %v3443_v32, %v3145_v34 }
0x1b73   :  { %v3158_v39 = vadd.f32 %v3444_v35, %v3152_v36 }
0x1b74   :  { %v3157_v38 = vadd.f32 %v3444_v35, %v3151_v37 }
0x1b76   :  { %3843 = vmatprep.mubr.msk.f32.mxu0 %vm176_vm5, %v3157_v38 }
0x1b77   :  { %3844 = vmatmul.mubr.msk.f32.vlgmr.msra.gmra.mrb[34].mxu0 %vm176_vm5, %v3158_v39 }
0x1b78   :  { %3976 = vmatpush3.bf16.msra.mxu0 %v3973_v41 }
0x1b79   :  { %3978 = vmatprep.subr.bf16.mxu0 %v3977_v45 }
0x1b7c   :  { %3980 = vmatpush3.bf16.msra.mxu0 %v3977_v45 }
0x1c4a   :  { %v3845_v47 = vpop.f32.mrb[34].mxu0 }
0x1c4b   :  { %v3246_v31 = vadd.f32 %v3845_v47, %v3445_v46  ;;  %v3240_v49 = vpop.f32.mrb[35].mxu0 }
0x1c4c   :  { %v3241_v63 = vadd.f32 %v3445_v46, %v3240_v49 }
0x1c4d   :  { %v3254_v50 = vmul.f32 %v3252_v48, %v3246_v31  ;;  %vm3251_vm13 = vcmp.gt.f32.partialorder %v3246_v31, 0.0 }
0x1c4e   :  { %vm3250_vm14 = vcmp.gt.f32.partialorder %v3241_v63, 0.0  ;;  %v3253_v51 = vmul.f32 %v3252_v48, %v3241_v63 }
0x1c4f   :  { %v3256_v52 = vsel %vm3251_vm13, %v3246_v31, %v3254_v50 }
0x1c50   :  { %v3255_v44 = vsel %vm3250_vm14, %v3241_v63, %v3253_v51 }
0x1c51   :  { %3854 = vmatprep.mubr.msk.f32.mxu0 %vm176_vm5, %v3255_v44 }
0x1c52   :  { %3855 = vmatmul.mubr.msk.f32.vlgmr.msra.gmra.mrb[36].mxu0 %vm176_vm5, %v3256_v52 }
0x1d25   :  { %v3856_v54 = vpop.f32.mrb[36].mxu0 }
0x1d26   :  { %v3344_v55 = vadd.f32 %v3856_v54, %v3449_v53  ;;  %v3338_v56 = vpop.f32.mrb[37].mxu0 }
0x1d27   :  { %v3339_v57 = vadd.f32 %v3449_v53, %v3338_v56 }
0x1d28   :  { %3348 = vst.msk [vmem:[#allocation9 + $0x8] sm:$0xff] %vm77_vm2, %v3344_v55 }
0x1d29   :  { %3347 = vst.msk [vmem:[#allocation9] sm:$0xff] %vm77_vm2, %v3339_v57 }
0x1d2a   :  { %4114 = shalt.err (!%p4111_p11)
}
0x1d2b   :  { %s4115_s15 = scalar_lea.hbm %s4567_s6, 256 }
0x1d2c   :  { %p4116_p12 = scmp.ne.s32.totalorder %s4567_s6, %s4115_s15  ;;  %p4119_p13 = scmp.lt.u32.totalorder %s4115_s15, %s4567_s6 }
0x1d2e   :  { %p4121_p0 = pnand %p4119_p13, %p4116_p12 }
0x1d30   :  { %4124 = shalt.err (!%p4121_p0)
}
0x1d31   :  { %3360 = dma.vmem_to_hbm [thread:$0]  %s3355_s12, 256, %s4567_s6, [#allocation4], %s4134_s7, %s4134_s7, %s4135_s8  }
0x1d32   :  { %4131 = dma.done.wait [#allocation4], 256  }
0x1d33   :  { %4132 = vsyncadd [#allocation4], 4294967040 }
0x1d34   :  { %3364 = vsyncpa [#allocation3], 1 }
0x1d35   :  { %3365 = vsyncpa [#allocation7], 1 }
0x1d36   :  { %3366 = vsyncpa [#allocation4], 1 }
0x1d37   :  { %3367 = vsyncpa [#allocation5], 1 }

</bundles_post_ra>
